<compile_context>
chip_gen: v7x
topology: tpu7x:2x2x1
jax: 0.10.0
libtpu: 0.0.40
codegen_flags: <defaults>
</compile_context>

<pallas_src>
import functools

import jax
import jax.numpy as jnp
from jax.experimental import pallas as pl
from jax.experimental.pallas import tpu as pltpu


def lstm_last_linear_kernel(x2d_ref, wih_ref, whh_ref, b_ref, wlin_ref,
                            blin_ref, out_ref):
    """Full LSTM over time + Linear on the last hidden state.

    x2d_ref:  (T*B_pad, I)   time-major input flattened over (T, B_pad), f32
    wih_ref:  (I, 4H)        transposed weight_ih_l0, i/f/o columns * 0.5
    whh_ref:  (H, 4H)        transposed weight_hh_l0, i/f/o columns * 0.5
    b_ref:    (1, 4H)        (bias_ih_l0 + bias_hh_l0), i/f/o columns * 0.5
    wlin_ref: (H, O_pad)     transposed + lane-padded linear weight
    blin_ref: (1, O_pad)     lane-padded linear bias
    out_ref:  (B_pad, O_pad)
    """
    TB, _ = x2d_ref.shape
    H = whh_ref.shape[0]
    B = out_ref.shape[0]          # B_pad (multiple of 8)
    T = TB // B                   # static Python int

    hp = jax.lax.Precision.HIGHEST
    whh = whh_ref[...]            # (H, 4H) — resident across all steps

    # Hoisted input projection + fused bias: one big MXU matmul, no recurrent dep.
    x_proj = (jnp.dot(x2d_ref[...], wih_ref[...],
                      preferred_element_type=jnp.float32, precision=hp)
              + b_ref[...])                                   # (T*B, 4H)

    h = jnp.zeros((B, H), jnp.float32)
    c = jnp.zeros((B, H), jnp.float32)

    # T is small and static -> full unroll; per step only h @ whh + one tanh
    # pass are on the serial critical path.
    for t in range(T):
        gates = (x_proj[t * B:(t + 1) * B, :]
                 + jnp.dot(h, whh, preferred_element_type=jnp.float32,
                           precision=hp))                     # (B, 4H)
        # i/f/o weight columns were pre-scaled by 0.5, so after ONE full-vreg
        # tanh pass:
        #   lanes [0H,1H) = tanh(z_i/2), [1H,2H) = tanh(z_f/2),
        #   lanes [2H,3H) = tanh(z_g),   [3H,4H) = tanh(z_o/2)
        # and sigmoid(z) = 0.5*tanh(z/2) + 0.5 (single VPU fma on the vreg).
        th = jnp.tanh(gates)          # (B, 4H) — one EUP pass
        sg = 0.5 * th + 0.5           # (B, 4H) — VPU
        i_g = sg[:, 0 * H:1 * H]
        f_g = sg[:, 1 * H:2 * H]
        g_g = th[:, 2 * H:3 * H]
        o_g = sg[:, 3 * H:4 * H]
        c = f_g * c + i_g * g_g
        h = o_g * jnp.tanh(c)

    # Lane-dense (B_pad, O_pad) output tile -> unmasked store.
    out_ref[...] = (jnp.dot(h, wlin_ref[...],
                            preferred_element_type=jnp.float32, precision=hp)
                    + blin_ref[...])


def init_params(key, input_size, hidden_size, output_size):
    """Deterministic PyTorch-style uniform(-1/sqrt(H), 1/sqrt(H)) init."""
    ks = jax.random.split(key, 6)
    k_lstm = 1.0 / jnp.sqrt(hidden_size)
    k_lin = 1.0 / jnp.sqrt(hidden_size)
    u = lambda k, shape, bound: jax.random.uniform(
        k, shape, jnp.float32, -bound, bound)
    return {
        "w_ih": u(ks[0], (4 * hidden_size, input_size), k_lstm),
        "w_hh": u(ks[1], (4 * hidden_size, hidden_size), k_lstm),
        "b_ih": u(ks[2], (4 * hidden_size,), k_lstm),
        "b_hh": u(ks[3], (4 * hidden_size,), k_lstm),
        "w_lin": u(ks[4], (output_size, hidden_size), k_lin),
        "b_lin": u(ks[5], (output_size,), k_lin),
    }


def pack_params(params):
    """One-time weight packing (hoisted off the per-call path).

    Transposes for MXU orientation, fuses the two LSTM biases, halves the
    i/f/o gate columns (single-tanh trick), and lane-pads the Linear to 128
    output lanes for an unmasked output store.
    """
    H = params["w_hh"].shape[1]
    O = params["w_lin"].shape[0]
    O_pad = ((O + 127) // 128) * 128

    # Column scale: 0.5 on i/f/o gates, 1.0 on g (PyTorch gate order i,f,g,o).
    scale = jnp.concatenate([
        jnp.full((H,), 0.5, jnp.float32),
        jnp.full((H,), 0.5, jnp.float32),
        jnp.ones((H,), jnp.float32),
        jnp.full((H,), 0.5, jnp.float32),
    ])

    wih_t = jnp.transpose(params["w_ih"]).astype(jnp.float32) * scale[None, :]
    whh_t = jnp.transpose(params["w_hh"]).astype(jnp.float32) * scale[None, :]
    b = ((params["b_ih"] + params["b_hh"]).astype(jnp.float32)
         * scale).reshape(1, 4 * H)
    wlin_t = jnp.pad(jnp.transpose(params["w_lin"]).astype(jnp.float32),
                     ((0, 0), (0, O_pad - O)))                 # (H, O_pad)
    blin = jnp.pad(params["b_lin"].astype(jnp.float32),
                   (0, O_pad - O)).reshape(1, O_pad)           # (1, O_pad)

    return {"wih_t": wih_t, "whh_t": whh_t, "b": b,
            "wlin_t": wlin_t, "blin": blin}


@functools.partial(jax.jit, static_argnames=("seq_time", "output_size"))
def lstm_model_forward(x, packed, seq_time, output_size):
    # Glue (slicing / transpose / padding) stays in plain JAX; weights are
    # already packed, so this is the only per-call pre-work.
    x = x.astype(jnp.float32)[:, :seq_time, :]
    B, T, I = x.shape
    H = packed["whh_t"].shape[0]
    O = output_size
    O_pad = packed["wlin_t"].shape[1]

    B_pad = ((B + 7) // 8) * 8            # f32 sublane count

    x_tm = jnp.transpose(x, (1, 0, 2))                        # (T, B, I)
    x_tm = jnp.pad(x_tm, ((0, 0), (0, B_pad - B), (0, 0)))    # (T, B_pad, I)
    x2d = x_tm.reshape(T * B_pad, I)                          # (T*B_pad, I)

    # Advisory cost estimate for XLA's scheduler.
    flops = int(2 * T * B_pad * I * 4 * H        # hoisted input projection
                + 2 * T * B_pad * H * 4 * H      # recurrent matmuls
                + 2 * B_pad * H * O_pad)         # final linear
    transcendentals = int(T * B_pad * (4 * H + H))
    bytes_accessed = int(4 * (x2d.size + packed["wih_t"].size
                              + packed["whh_t"].size + packed["b"].size
                              + packed["wlin_t"].size + packed["blin"].size
                              + B_pad * O_pad))

    out = pl.pallas_call(
        lstm_last_linear_kernel,
        out_shape=jax.ShapeDtypeStruct((B_pad, O_pad), jnp.float32),
        in_specs=[pl.BlockSpec(memory_space=pltpu.MemorySpace.VMEM)] * 6,
        out_specs=pl.BlockSpec(memory_space=pltpu.MemorySpace.VMEM),
        cost_estimate=pl.CostEstimate(flops=flops,
                                      transcendentals=transcendentals,
                                      bytes_accessed=bytes_accessed),
    )(x2d, packed["wih_t"], packed["whh_t"], packed["b"],
      packed["wlin_t"], packed["blin"])

    return out[:B, :O]


def reference_forward(x, params, seq_time):
    """Pure-JAX reference replicating nn.LSTM + nn.Linear semantics."""
    x = x.astype(jnp.float32)[:, :seq_time, :]
    B = x.shape[0]
    H = params["w_hh"].shape[1]
    hp = jax.lax.Precision.HIGHEST
    h = jnp.zeros((B, H), jnp.float32)
    c = jnp.zeros((B, H), jnp.float32)
    for t in range(x.shape[1]):
        gates = (jnp.dot(x[:, t, :], params["w_ih"].T, precision=hp)
                 + params["b_ih"]
                 + jnp.dot(h, params["w_hh"].T, precision=hp)
                 + params["b_hh"])
        i_g = jax.nn.sigmoid(gates[:, 0 * H:1 * H])
        f_g = jax.nn.sigmoid(gates[:, 1 * H:2 * H])
        g_g = jnp.tanh(gates[:, 2 * H:3 * H])
        o_g = jax.nn.sigmoid(gates[:, 3 * H:4 * H])
        c = f_g * c + i_g * g_g
        h = o_g * jnp.tanh(c)
    return jnp.dot(h, params["w_lin"].T, precision=hp) + params["b_lin"]


if __name__ == "__main__":
    # Small shapes consistent with the module's forward.
    batch = 2
    seq_time = 8
    input_size = 4
    hidden_size = 32
    output_size = 4

    key = jax.random.PRNGKey(0)
    k_param, k_x = jax.random.split(key)
    params = init_params(k_param, input_size, hidden_size, output_size)
    packed = pack_params(params)   # one-time weight packing
    x = jax.random.normal(k_x, (batch, seq_time, input_size), jnp.float32)

    out = lstm_model_forward(x, packed, seq_time, output_size)
    out = jax.block_until_ready(out)

    ref = reference_forward(x, params, seq_time)
    assert out.shape == (batch, output_size)
    assert jnp.allclose(out, ref, atol=1e-5, rtol=1e-5), (
        "max abs err = %f" % float(jnp.max(jnp.abs(out - ref))))

    print("KERNEL_OK")
</pallas_src>

<mosaic_0001>
module attributes {stable_mosaic.version = 11 : i64} {
  func.func @lstm_last_linear_kernel(%arg0: memref<64x4xf32, #tpu.memory_space<vmem>>, %arg1: memref<4x128xf32, #tpu.memory_space<vmem>>, %arg2: memref<32x128xf32, #tpu.memory_space<vmem>>, %arg3: memref<1x128xf32, #tpu.memory_space<vmem>>, %arg4: memref<32x128xf32, #tpu.memory_space<vmem>>, %arg5: memref<1x128xf32, #tpu.memory_space<vmem>>, %arg6: memref<8x128xf32, #tpu.memory_space<vmem>>) attributes {dimension_semantics = [], scalar_prefetch = 0 : i64, scratch_operands = 0 : i64, tpu.core_type = #tpu.core_type<tc>} {
    %c0 = arith.constant 0 : index
    %c0_0 = arith.constant 0 : index
    %0 = vector.load %arg2[%c0, %c0_0] : memref<32x128xf32, #tpu.memory_space<vmem>>, vector<32x128xf32>
    %c0_1 = arith.constant 0 : index
    %c0_2 = arith.constant 0 : index
    %1 = vector.load %arg0[%c0_1, %c0_2] : memref<64x4xf32, #tpu.memory_space<vmem>>, vector<64x4xf32>
    %c0_3 = arith.constant 0 : index
    %c0_4 = arith.constant 0 : index
    %2 = vector.load %arg1[%c0_3, %c0_4] : memref<4x128xf32, #tpu.memory_space<vmem>>, vector<4x128xf32>
    %cst = arith.constant dense<0.000000e+00> : vector<64x128xf32>
    %3 = tpu.matmul %1, %2, %cst {dimension_numbers = #tpu.dot_dimension_numbers<[1], [0], [0], [1], [0, 0, 1, 1], [], []>, precision = #tpu.contract_precision<fp32>} : vector<64x4xf32>, vector<4x128xf32>, vector<64x128xf32> -> vector<64x128xf32>
    %c0_5 = arith.constant 0 : index
    %c0_6 = arith.constant 0 : index
    %4 = vector.load %arg3[%c0_5, %c0_6] : memref<1x128xf32, #tpu.memory_space<vmem>>, vector<1x128xf32>
    %5 = vector.broadcast %4 : vector<1x128xf32> to vector<64x128xf32>
    %6 = arith.addf %3, %5 : vector<64x128xf32>
    %cst_7 = arith.constant 0.000000e+00 : f32
    %7 = vector.broadcast %cst_7 : f32 to vector<8x32xf32>
    %cst_8 = arith.constant 0.000000e+00 : f32
    %8 = vector.broadcast %cst_8 : f32 to vector<8x32xf32>
    %9 = vector.extract_strided_slice %6 {offsets = [0, 0], sizes = [8, 128], strides = [1, 1]} : vector<64x128xf32> to vector<8x128xf32>
    %cst_9 = arith.constant dense<0.000000e+00> : vector<8x128xf32>
    %10 = tpu.matmul %7, %0, %cst_9 {dimension_numbers = #tpu.dot_dimension_numbers<[1], [0], [0], [1], [0, 0, 1, 1], [], []>, precision = #tpu.contract_precision<fp32>} : vector<8x32xf32>, vector<32x128xf32>, vector<8x128xf32> -> vector<8x128xf32>
    %11 = arith.addf %9, %10 : vector<8x128xf32>
    %12 = math.tanh %11 : vector<8x128xf32>
    %cst_10 = arith.constant 5.000000e-01 : f32
    %13 = vector.broadcast %cst_10 : f32 to vector<8x128xf32>
    %14 = arith.mulf %13, %12 : vector<8x128xf32>
    %cst_11 = arith.constant 5.000000e-01 : f32
    %15 = vector.broadcast %cst_11 : f32 to vector<8x128xf32>
    %16 = arith.addf %14, %15 : vector<8x128xf32>
    %17 = vector.extract_strided_slice %16 {offsets = [0, 0], sizes = [8, 32], strides = [1, 1]} : vector<8x128xf32> to vector<8x32xf32>
    %18 = vector.extract_strided_slice %16 {offsets = [0, 32], sizes = [8, 32], strides = [1, 1]} : vector<8x128xf32> to vector<8x32xf32>
    %19 = vector.extract_strided_slice %12 {offsets = [0, 64], sizes = [8, 32], strides = [1, 1]} : vector<8x128xf32> to vector<8x32xf32>
    %20 = vector.extract_strided_slice %16 {offsets = [0, 96], sizes = [8, 32], strides = [1, 1]} : vector<8x128xf32> to vector<8x32xf32>
    %21 = arith.mulf %18, %8 : vector<8x32xf32>
    %22 = arith.mulf %17, %19 : vector<8x32xf32>
    %23 = arith.addf %21, %22 : vector<8x32xf32>
    %24 = math.tanh %23 : vector<8x32xf32>
    %25 = arith.mulf %20, %24 : vector<8x32xf32>
    %26 = vector.extract_strided_slice %6 {offsets = [8, 0], sizes = [8, 128], strides = [1, 1]} : vector<64x128xf32> to vector<8x128xf32>
    %cst_12 = arith.constant dense<0.000000e+00> : vector<8x128xf32>
    %27 = tpu.matmul %25, %0, %cst_12 {dimension_numbers = #tpu.dot_dimension_numbers<[1], [0], [0], [1], [0, 0, 1, 1], [], []>, precision = #tpu.contract_precision<fp32>} : vector<8x32xf32>, vector<32x128xf32>, vector<8x128xf32> -> vector<8x128xf32>
    %28 = arith.addf %26, %27 : vector<8x128xf32>
    %29 = math.tanh %28 : vector<8x128xf32>
    %cst_13 = arith.constant 5.000000e-01 : f32
    %30 = vector.broadcast %cst_13 : f32 to vector<8x128xf32>
    %31 = arith.mulf %30, %29 : vector<8x128xf32>
    %cst_14 = arith.constant 5.000000e-01 : f32
    %32 = vector.broadcast %cst_14 : f32 to vector<8x128xf32>
    %33 = arith.addf %31, %32 : vector<8x128xf32>
    %34 = vector.extract_strided_slice %33 {offsets = [0, 0], sizes = [8, 32], strides = [1, 1]} : vector<8x128xf32> to vector<8x32xf32>
    %35 = vector.extract_strided_slice %33 {offsets = [0, 32], sizes = [8, 32], strides = [1, 1]} : vector<8x128xf32> to vector<8x32xf32>
    %36 = vector.extract_strided_slice %29 {offsets = [0, 64], sizes = [8, 32], strides = [1, 1]} : vector<8x128xf32> to vector<8x32xf32>
    %37 = vector.extract_strided_slice %33 {offsets = [0, 96], sizes = [8, 32], strides = [1, 1]} : vector<8x128xf32> to vector<8x32xf32>
    %38 = arith.mulf %35, %23 : vector<8x32xf32>
    %39 = arith.mulf %34, %36 : vector<8x32xf32>
    %40 = arith.addf %38, %39 : vector<8x32xf32>
    %41 = math.tanh %40 : vector<8x32xf32>
    %42 = arith.mulf %37, %41 : vector<8x32xf32>
    %43 = vector.extract_strided_slice %6 {offsets = [16, 0], sizes = [8, 128], strides = [1, 1]} : vector<64x128xf32> to vector<8x128xf32>
    %cst_15 = arith.constant dense<0.000000e+00> : vector<8x128xf32>
    %44 = tpu.matmul %42, %0, %cst_15 {dimension_numbers = #tpu.dot_dimension_numbers<[1], [0], [0], [1], [0, 0, 1, 1], [], []>, precision = #tpu.contract_precision<fp32>} : vector<8x32xf32>, vector<32x128xf32>, vector<8x128xf32> -> vector<8x128xf32>
    %45 = arith.addf %43, %44 : vector<8x128xf32>
    %46 = math.tanh %45 : vector<8x128xf32>
    %cst_16 = arith.constant 5.000000e-01 : f32
    %47 = vector.broadcast %cst_16 : f32 to vector<8x128xf32>
    %48 = arith.mulf %47, %46 : vector<8x128xf32>
    %cst_17 = arith.constant 5.000000e-01 : f32
    %49 = vector.broadcast %cst_17 : f32 to vector<8x128xf32>
    %50 = arith.addf %48, %49 : vector<8x128xf32>
    %51 = vector.extract_strided_slice %50 {offsets = [0, 0], sizes = [8, 32], strides = [1, 1]} : vector<8x128xf32> to vector<8x32xf32>
    %52 = vector.extract_strided_slice %50 {offsets = [0, 32], sizes = [8, 32], strides = [1, 1]} : vector<8x128xf32> to vector<8x32xf32>
    %53 = vector.extract_strided_slice %46 {offsets = [0, 64], sizes = [8, 32], strides = [1, 1]} : vector<8x128xf32> to vector<8x32xf32>
    %54 = vector.extract_strided_slice %50 {offsets = [0, 96], sizes = [8, 32], strides = [1, 1]} : vector<8x128xf32> to vector<8x32xf32>
    %55 = arith.mulf %52, %40 : vector<8x32xf32>
    %56 = arith.mulf %51, %53 : vector<8x32xf32>
    %57 = arith.addf %55, %56 : vector<8x32xf32>
    %58 = math.tanh %57 : vector<8x32xf32>
    %59 = arith.mulf %54, %58 : vector<8x32xf32>
    %60 = vector.extract_strided_slice %6 {offsets = [24, 0], sizes = [8, 128], strides = [1, 1]} : vector<64x128xf32> to vector<8x128xf32>
    %cst_18 = arith.constant dense<0.000000e+00> : vector<8x128xf32>
    %61 = tpu.matmul %59, %0, %cst_18 {dimension_numbers = #tpu.dot_dimension_numbers<[1], [0], [0], [1], [0, 0, 1, 1], [], []>, precision = #tpu.contract_precision<fp32>} : vector<8x32xf32>, vector<32x128xf32>, vector<8x128xf32> -> vector<8x128xf32>
    %62 = arith.addf %60, %61 : vector<8x128xf32>
    %63 = math.tanh %62 : vector<8x128xf32>
    %cst_19 = arith.constant 5.000000e-01 : f32
    %64 = vector.broadcast %cst_19 : f32 to vector<8x128xf32>
    %65 = arith.mulf %64, %63 : vector<8x128xf32>
    %cst_20 = arith.constant 5.000000e-01 : f32
    %66 = vector.broadcast %cst_20 : f32 to vector<8x128xf32>
    %67 = arith.addf %65, %66 : vector<8x128xf32>
    %68 = vector.extract_strided_slice %67 {offsets = [0, 0], sizes = [8, 32], strides = [1, 1]} : vector<8x128xf32> to vector<8x32xf32>
    %69 = vector.extract_strided_slice %67 {offsets = [0, 32], sizes = [8, 32], strides = [1, 1]} : vector<8x128xf32> to vector<8x32xf32>
    %70 = vector.extract_strided_slice %63 {offsets = [0, 64], sizes = [8, 32], strides = [1, 1]} : vector<8x128xf32> to vector<8x32xf32>
    %71 = vector.extract_strided_slice %67 {offsets = [0, 96], sizes = [8, 32], strides = [1, 1]} : vector<8x128xf32> to vector<8x32xf32>
    %72 = arith.mulf %69, %57 : vector<8x32xf32>
    %73 = arith.mulf %68, %70 : vector<8x32xf32>
    %74 = arith.addf %72, %73 : vector<8x32xf32>
    %75 = math.tanh %74 : vector<8x32xf32>
    %76 = arith.mulf %71, %75 : vector<8x32xf32>
    %77 = vector.extract_strided_slice %6 {offsets = [32, 0], sizes = [8, 128], strides = [1, 1]} : vector<64x128xf32> to vector<8x128xf32>
    %cst_21 = arith.constant dense<0.000000e+00> : vector<8x128xf32>
    %78 = tpu.matmul %76, %0, %cst_21 {dimension_numbers = #tpu.dot_dimension_numbers<[1], [0], [0], [1], [0, 0, 1, 1], [], []>, precision = #tpu.contract_precision<fp32>} : vector<8x32xf32>, vector<32x128xf32>, vector<8x128xf32> -> vector<8x128xf32>
    %79 = arith.addf %77, %78 : vector<8x128xf32>
    %80 = math.tanh %79 : vector<8x128xf32>
    %cst_22 = arith.constant 5.000000e-01 : f32
    %81 = vector.broadcast %cst_22 : f32 to vector<8x128xf32>
    %82 = arith.mulf %81, %80 : vector<8x128xf32>
    %cst_23 = arith.constant 5.000000e-01 : f32
    %83 = vector.broadcast %cst_23 : f32 to vector<8x128xf32>
    %84 = arith.addf %82, %83 : vector<8x128xf32>
    %85 = vector.extract_strided_slice %84 {offsets = [0, 0], sizes = [8, 32], strides = [1, 1]} : vector<8x128xf32> to vector<8x32xf32>
    %86 = vector.extract_strided_slice %84 {offsets = [0, 32], sizes = [8, 32], strides = [1, 1]} : vector<8x128xf32> to vector<8x32xf32>
    %87 = vector.extract_strided_slice %80 {offsets = [0, 64], sizes = [8, 32], strides = [1, 1]} : vector<8x128xf32> to vector<8x32xf32>
    %88 = vector.extract_strided_slice %84 {offsets = [0, 96], sizes = [8, 32], strides = [1, 1]} : vector<8x128xf32> to vector<8x32xf32>
    %89 = arith.mulf %86, %74 : vector<8x32xf32>
    %90 = arith.mulf %85, %87 : vector<8x32xf32>
    %91 = arith.addf %89, %90 : vector<8x32xf32>
    %92 = math.tanh %91 : vector<8x32xf32>
    %93 = arith.mulf %88, %92 : vector<8x32xf32>
    %94 = vector.extract_strided_slice %6 {offsets = [40, 0], sizes = [8, 128], strides = [1, 1]} : vector<64x128xf32> to vector<8x128xf32>
    %cst_24 = arith.constant dense<0.000000e+00> : vector<8x128xf32>
    %95 = tpu.matmul %93, %0, %cst_24 {dimension_numbers = #tpu.dot_dimension_numbers<[1], [0], [0], [1], [0, 0, 1, 1], [], []>, precision = #tpu.contract_precision<fp32>} : vector<8x32xf32>, vector<32x128xf32>, vector<8x128xf32> -> vector<8x128xf32>
    %96 = arith.addf %94, %95 : vector<8x128xf32>
    %97 = math.tanh %96 : vector<8x128xf32>
    %cst_25 = arith.constant 5.000000e-01 : f32
    %98 = vector.broadcast %cst_25 : f32 to vector<8x128xf32>
    %99 = arith.mulf %98, %97 : vector<8x128xf32>
    %cst_26 = arith.constant 5.000000e-01 : f32
    %100 = vector.broadcast %cst_26 : f32 to vector<8x128xf32>
    %101 = arith.addf %99, %100 : vector<8x128xf32>
    %102 = vector.extract_strided_slice %101 {offsets = [0, 0], sizes = [8, 32], strides = [1, 1]} : vector<8x128xf32> to vector<8x32xf32>
    %103 = vector.extract_strided_slice %101 {offsets = [0, 32], sizes = [8, 32], strides = [1, 1]} : vector<8x128xf32> to vector<8x32xf32>
    %104 = vector.extract_strided_slice %97 {offsets = [0, 64], sizes = [8, 32], strides = [1, 1]} : vector<8x128xf32> to vector<8x32xf32>
    %105 = vector.extract_strided_slice %101 {offsets = [0, 96], sizes = [8, 32], strides = [1, 1]} : vector<8x128xf32> to vector<8x32xf32>
    %106 = arith.mulf %103, %91 : vector<8x32xf32>
    %107 = arith.mulf %102, %104 : vector<8x32xf32>
    %108 = arith.addf %106, %107 : vector<8x32xf32>
    %109 = math.tanh %108 : vector<8x32xf32>
    %110 = arith.mulf %105, %109 : vector<8x32xf32>
    %111 = vector.extract_strided_slice %6 {offsets = [48, 0], sizes = [8, 128], strides = [1, 1]} : vector<64x128xf32> to vector<8x128xf32>
    %cst_27 = arith.constant dense<0.000000e+00> : vector<8x128xf32>
    %112 = tpu.matmul %110, %0, %cst_27 {dimension_numbers = #tpu.dot_dimension_numbers<[1], [0], [0], [1], [0, 0, 1, 1], [], []>, precision = #tpu.contract_precision<fp32>} : vector<8x32xf32>, vector<32x128xf32>, vector<8x128xf32> -> vector<8x128xf32>
    %113 = arith.addf %111, %112 : vector<8x128xf32>
    %114 = math.tanh %113 : vector<8x128xf32>
    %cst_28 = arith.constant 5.000000e-01 : f32
    %115 = vector.broadcast %cst_28 : f32 to vector<8x128xf32>
    %116 = arith.mulf %115, %114 : vector<8x128xf32>
    %cst_29 = arith.constant 5.000000e-01 : f32
    %117 = vector.broadcast %cst_29 : f32 to vector<8x128xf32>
    %118 = arith.addf %116, %117 : vector<8x128xf32>
    %119 = vector.extract_strided_slice %118 {offsets = [0, 0], sizes = [8, 32], strides = [1, 1]} : vector<8x128xf32> to vector<8x32xf32>
    %120 = vector.extract_strided_slice %118 {offsets = [0, 32], sizes = [8, 32], strides = [1, 1]} : vector<8x128xf32> to vector<8x32xf32>
    %121 = vector.extract_strided_slice %114 {offsets = [0, 64], sizes = [8, 32], strides = [1, 1]} : vector<8x128xf32> to vector<8x32xf32>
    %122 = vector.extract_strided_slice %118 {offsets = [0, 96], sizes = [8, 32], strides = [1, 1]} : vector<8x128xf32> to vector<8x32xf32>
    %123 = arith.mulf %120, %108 : vector<8x32xf32>
    %124 = arith.mulf %119, %121 : vector<8x32xf32>
    %125 = arith.addf %123, %124 : vector<8x32xf32>
    %126 = math.tanh %125 : vector<8x32xf32>
    %127 = arith.mulf %122, %126 : vector<8x32xf32>
    %128 = vector.extract_strided_slice %6 {offsets = [56, 0], sizes = [8, 128], strides = [1, 1]} : vector<64x128xf32> to vector<8x128xf32>
    %cst_30 = arith.constant dense<0.000000e+00> : vector<8x128xf32>
    %129 = tpu.matmul %127, %0, %cst_30 {dimension_numbers = #tpu.dot_dimension_numbers<[1], [0], [0], [1], [0, 0, 1, 1], [], []>, precision = #tpu.contract_precision<fp32>} : vector<8x32xf32>, vector<32x128xf32>, vector<8x128xf32> -> vector<8x128xf32>
    %130 = arith.addf %128, %129 : vector<8x128xf32>
    %131 = math.tanh %130 : vector<8x128xf32>
    %cst_31 = arith.constant 5.000000e-01 : f32
    %132 = vector.broadcast %cst_31 : f32 to vector<8x128xf32>
    %133 = arith.mulf %132, %131 : vector<8x128xf32>
    %cst_32 = arith.constant 5.000000e-01 : f32
    %134 = vector.broadcast %cst_32 : f32 to vector<8x128xf32>
    %135 = arith.addf %133, %134 : vector<8x128xf32>
    %136 = vector.extract_strided_slice %135 {offsets = [0, 0], sizes = [8, 32], strides = [1, 1]} : vector<8x128xf32> to vector<8x32xf32>
    %137 = vector.extract_strided_slice %135 {offsets = [0, 32], sizes = [8, 32], strides = [1, 1]} : vector<8x128xf32> to vector<8x32xf32>
    %138 = vector.extract_strided_slice %131 {offsets = [0, 64], sizes = [8, 32], strides = [1, 1]} : vector<8x128xf32> to vector<8x32xf32>
    %139 = vector.extract_strided_slice %135 {offsets = [0, 96], sizes = [8, 32], strides = [1, 1]} : vector<8x128xf32> to vector<8x32xf32>
    %140 = arith.mulf %137, %125 : vector<8x32xf32>
    %141 = arith.mulf %136, %138 : vector<8x32xf32>
    %142 = arith.addf %140, %141 : vector<8x32xf32>
    %143 = math.tanh %142 : vector<8x32xf32>
    %144 = arith.mulf %139, %143 : vector<8x32xf32>
    %c0_33 = arith.constant 0 : index
    %c0_34 = arith.constant 0 : index
    %145 = vector.load %arg4[%c0_33, %c0_34] : memref<32x128xf32, #tpu.memory_space<vmem>>, vector<32x128xf32>
    %cst_35 = arith.constant dense<0.000000e+00> : vector<8x128xf32>
    %146 = tpu.matmul %144, %145, %cst_35 {dimension_numbers = #tpu.dot_dimension_numbers<[1], [0], [0], [1], [0, 0, 1, 1], [], []>, precision = #tpu.contract_precision<fp32>} : vector<8x32xf32>, vector<32x128xf32>, vector<8x128xf32> -> vector<8x128xf32>
    %c0_36 = arith.constant 0 : index
    %c0_37 = arith.constant 0 : index
    %147 = vector.load %arg5[%c0_36, %c0_37] : memref<1x128xf32, #tpu.memory_space<vmem>>, vector<1x128xf32>
    %148 = vector.broadcast %147 : vector<1x128xf32> to vector<8x128xf32>
    %149 = arith.addf %146, %148 : vector<8x128xf32>
    %c0_38 = arith.constant 0 : index
    %c0_39 = arith.constant 0 : index
    %150 = vector.load %arg6[%c0_38, %c0_39] : memref<8x128xf32, #tpu.memory_space<vmem>>, vector<8x128xf32>
    tpu.vector_store %arg6[%c0_38, %c0_39], %149 {strides = array<i32>} : memref<8x128xf32, #tpu.memory_space<vmem>>, vector<8x128xf32>,
    return
  }
}

</mosaic_0001>

<bundles_post_ra>
// kernel: lstm_model_forward.1
= control target key start
LH: loop header
LB: loop body
LE: loop exit
PB: predicated region body
PF: predicated region fallthrough
CT: control target
= control target key end

     0   :  { %vm68_vm0 = vcmask 1043456   ;;  %vm43_vm1 = vcmask 31744   ;;  %vm6919_vm2 = vmmov 0   ;;  %s6922_s22 = smov 32   ;;  %vm819_vm3 = vcmask 261120   ;;  %s7596_s1 = inlined_call_operand.vmem [shape: f32[4,128], index: 1, kind: input, shape index: {}]   ;;  %s7597_s0 = inlined_call_operand.vmem [shape: f32[64,4], index: 0, kind: input, shape index: {}]   ;;  %s7598_s2 = inlined_call_operand.vmem [shape: f32[32,128], index: 2, kind: input, shape index: {}]   ;;  %s7599_s3 = inlined_call_operand.vmem [shape: f32[1,128], index: 3, kind: input, shape index: {}]   ;;  %s7600_s4 = inlined_call_operand.vmem [shape: f32[32,128], index: 4, kind: input, shape index: {}]   ;;  %s7601_s5 = inlined_call_operand.vmem [shape: f32[1,128], index: 5, kind: input, shape index: {}]   ;;  %s7602_s6 = inlined_call_operand.vmem [shape: f32[8,128], index: 6, kind: output, shape index: {}]  }
   0x1   :  { %v35_v0 = vld [vmem:[%s7596_s1] sm:$0xf]  ;;  %v28_v2 = vld [vmem:[%s7597_s0 + $0x8] sm:$0xff]  ;;  %v29_v6 = vld [vmem:[%s7597_s0 + $0x10] sm:$0xff] }
   0x2   :  { %v27_v1 = vld [vmem:[%s7597_s0] sm:$0xff]  ;;  %v70_v3 = vsel %vm68_vm0, %v35_v0, 0  ;;  %v48_v5 = vsel %vm43_vm1, %v28_v2, 0  ;;  %v30_v7 = vld [vmem:[%s7597_s0 + $0x18] sm:$0xff]  ;;  %v51_v12 = vsel %vm43_vm1, %v29_v6, 0  ;;  %v32_v13 = vld [vmem:[%s7597_s0 + $0x28] sm:$0xff] }
   0x3   :  { %v45_v4 = vsel %vm43_vm1, %v27_v1, 0  ;;  %v31_v8 = vld [vmem:[%s7597_s0 + $0x20] sm:$0xff]  ;;  %v6978_v9 = vand.u32 4294901760, %v70_v3  ;;  %v6982_v11 = vand.u32 4294901760, %v48_v5  ;;  %v33_v14 = vld [vmem:[%s7597_s0 + $0x30] sm:$0xff]  ;;  %v6991_v15 = vand.u32 4294901760, %v51_v12 }
   0x4   :  { %v6980_v10 = vand.u32 4294901760, %v45_v4  ;;  %v54_v16 = vsel %vm43_vm1, %v30_v7, 0  ;;  %v57_v17 = vsel %vm43_vm1, %v31_v8, 0  ;;  %v60_v18 = vsel %vm43_vm1, %v32_v13, 0  ;;  %v34_v43 = vld [vmem:[%s7597_s0 + $0x38] sm:$0xff]  ;;  %v23_v51 = vld [vmem:[%s7598_s2] sm:$0xff] }
   0x5   :  { %5738 = vmatprep.subr.mxu1 %v6978_v9  ;;  %v220_v20 = vsub.f32 %v70_v3, %v6978_v9  ;;  %v7002_v21 = vsub.f32 %v48_v5, %v6982_v11  ;;  %v7005_v22 = vand.u32 4294901760, %v54_v16  ;;  %v7009_v23 = vsub.f32 %v51_v12, %v6991_v15  ;;  %v24_v52 = vld [vmem:[%s7598_s2 + $0x8] sm:$0xff]  ;;  %v25_v61 = vld [vmem:[%s7598_s2 + $0x10] sm:$0xff]  ;;  %v26_v63 = vld [vmem:[%s7598_s2 + $0x18] sm:$0xff] }
   0x6   :  { %v6998_v19 = vsub.f32 %v45_v4, %v6980_v10  ;;  %5754 = vmatprep.mubr.f32.mxu0 %v6980_v10  ;;  %5739 = vmatpush3.msra.mxu1 %v6978_v9  ;;  %v7011_v24 = vand.u32 4294901760, %v57_v17  ;;  %v7013_v25 = vand.u32 4294901760, %v60_v18  ;;  %v63_v26 = vsel %vm43_vm1, %v33_v14, 0 }
   0x7   :  { %v7017_v28 = vand.u32 4294901760, %v220_v20  ;;  %v150_v29 = vand.u32 4294901760, %v7002_v21  ;;  %v7021_v30 = vsub.f32 %v54_v16, %v7005_v22  ;;  %v160_v31 = vand.u32 4294901760, %v7009_v23 }
   0x8   :  { %v140_v27 = vand.u32 4294901760, %v6998_v19  ;;  %v7025_v32 = vsub.f32 %v57_v17, %v7011_v24  ;;  %v7028_v33 = vsub.f32 %v60_v18, %v7013_v25  ;;  %v7030_v34 = vand.u32 4294901760, %v63_v26 }
   0x9   :  { %v222_v36 = vsub.f32 %v220_v20, %v7017_v28  ;;  %v151_v37 = vsub.f32 %v7002_v21, %v150_v29  ;;  %v170_v38 = vand.u32 4294901760, %v7021_v30  ;;  %v161_v39 = vsub.f32 %v7009_v23, %v160_v31 }
   0xa   :  { %v141_v35 = vsub.f32 %v6998_v19, %v140_v27  ;;  %v180_v40 = vand.u32 4294901760, %v7025_v32  ;;  %v190_v41 = vand.u32 4294901760, %v7028_v33  ;;  %v7046_v42 = vsub.f32 %v63_v26, %v7030_v34 }
   0xb   :  { %v223_v45 = vand.u32 4294901760, %v222_v36  ;;  %v152_v46 = vand.u32 4294901760, %v151_v37  ;;  %v171_v47 = vsub.f32 %v7021_v30, %v170_v38  ;;  %v162_v48 = vand.u32 4294901760, %v161_v39 }
   0xc   :  { %v142_v44 = vand.u32 4294901760, %v141_v35  ;;  %v181_v49 = vsub.f32 %v7025_v32, %v180_v40  ;;  %v200_v50 = vand.u32 4294901760, %v7046_v42  ;;  %v66_v53 = vsel %vm43_vm1, %v34_v43, 0 }
   0xd   :  { %5752 = vmatprep.subr.mxu0 %v223_v45  ;;  %6740 = vmatprep.subr.mxu1 %v223_v45  ;;  %v172_v54 = vand.u32 4294901760, %v171_v47  ;;  %v191_v55 = vsub.f32 %v7028_v33, %v190_v41  ;;  %v7068_v56 = vand.u32 4294901760, %v66_v53  ;;  %v824_v59 = vand.u32 4294901760, %v23_v51 }
   0xe   :  { %5740 = vmatprep.mubr.f32.mxu1 %v142_v44  ;;  %5753 = vmatpush3.msra.mxu0 %v223_v45  ;;  %v182_v57 = vand.u32 4294901760, %v181_v49  ;;  %v201_v58 = vsub.f32 %v7046_v42, %v200_v50  ;;  %v827_v60 = vand.u32 4294901760, %v24_v52  ;;  %v830_v2 = vand.u32 4294901760, %v25_v61 }
   0xf   :  { %5741 = vmatmul.mubr.f32.vlgmr.msra.gmra.mrb[0].mxu1 %v152_v46  ;;  %5755 = vmatmul.mubr.f32.vlgmr.msra.gmra.mrb[0].mxu0 %v6982_v11  ;;  %v7078_v62 = vsub.f32 %v66_v53, %v7068_v56  ;;  %v192_v0 = vand.u32 4294901760, %v191_v55  ;;  %v833_v4 = vand.u32 4294901760, %v26_v63  ;;  %v7086_v5 = vsub.f32 %v23_v51, %v824_v59 }
  0x10   :  { %6741 = vmatpush3.msra.mxu1 %v223_v45  ;;  %5743 = vmatprep.mubr.f32.mxu1 %v162_v48  ;;  %v202_v3 = vand.u32 4294901760, %v201_v58  ;;  %v7088_v6 = vsub.f32 %v24_v52, %v827_v60  ;;  %v6918_v8 = vmov 0.0|0.0   ;;  %v7098_v16 = vsub.f32 %v25_v61, %v830_v2 }
  0x11   :  { %5757 = vmatprep.mubr.f32.mxu0 %v6991_v15  ;;  %5766 = vmatprep.subr.mxu0 %v220_v20  ;;  %v210_v1 = vand.u32 4294901760, %v7078_v62  ;;  %v905_v13 = vand.u32 4294901760, %v7086_v5  ;;  %v7100_v17 = vsub.f32 %v26_v63, %v833_v4  ;;  %v7105_v18 = vpack.c.bf16 %v827_v60, %v824_v59 }
  0x12   :  { %5767 = vmatpush3.msra.mxu0 %v220_v20  ;;  %6416 = vmatprep.subr.bf16.mxu1 %v6918_v8  ;;  %v912_v14 = vand.u32 4294901760, %v7088_v6  ;;  %v919_v35 = vand.u32 4294901760, %v7098_v16  ;;  %v7120_v37 = vpack.c.bf16 %v833_v4, %v830_v2  ;;  %v6920_v46 = vmov 0.0  }
  0x13   :  { %5744 = vmatmul.mubr.f32.gmra.mrb[2].mxu1 %v172_v54  ;;  %5780 = vmatprep.subr.mxu0 %v6978_v9  ;;  %v211_v7 = vsub.f32 %v7078_v62, %v210_v1  ;;  %v906_v20 = vsub.f32 %v7086_v5, %v905_v13  ;;  %v926_v36 = vand.u32 4294901760, %v7100_v17 }
  0x14   :  { %5746 = vmatprep.mubr.f32.mxu1 %v182_v57  ;;  %5758 = vmatmul.mubr.f32.gmra.mrb[2].mxu0 %v7005_v22  ;;  %v913_v26 = vsub.f32 %v7088_v6, %v912_v14  ;;  %v920_v44 = vsub.f32 %v7098_v16, %v919_v35 }
  0x15   :  { %5768 = vmatprep.mubr.f32.mxu0 %v6998_v19  ;;  %v212_v12 = vand.u32 4294901760, %v211_v7  ;;  %v907_v39 = vand.u32 4294901760, %v906_v20  ;;  %v927_v45 = vsub.f32 %v7100_v17, %v926_v36  ;;  %v7159_v19 = vpack.c.bf16 %v7088_v6, %v7086_v5 }
  0x16   :  { %v914_v43 = vand.u32 4294901760, %v913_v26  ;;  %v921_v48 = vand.u32 4294901760, %v920_v44 }
  0x17   :  { %5747 = vmatmul.mubr.f32.gmra.mrb[4].mxu1 %v192_v0  ;;  %v928_v49 = vand.u32 4294901760, %v927_v45 }
  0x18   :  { %5749 = vmatprep.mubr.f32.mxu1 %v202_v3  ;;  %5769 = vmatmul.mubr.f32.vlgmr.msra.gmra.mrb[0].mxu0 %v7002_v21  ;;  %v7137_v47 = vpack.c.bf16 %v914_v43, %v907_v39  ;;  %v7170_v21 = vpack.c.bf16 %v7100_v17, %v7098_v16 }
  0x19   :  { %5771 = vmatprep.mubr.f32.mxu0 %v7009_v23  ;;  %5781 = vmatpush3.msra.mxu0 %v6978_v9  ;;  %v7145_v51 = vpack.c.bf16 %v928_v49, %v921_v48  ;;  %v7198_v23 = vpack.c.bf16 %v912_v14, %v905_v13 }
  0x1a   :  { %5794 = vmatprep.subr.mxu0 %v7017_v28 }
  0x1b   :  { %5750 = vmatmul.mubr.f32.gmra.mrb[6].mxu1 %v212_v12 }
  0x1c   :  { %5760 = vmatprep.mubr.f32.mxu1 %v7011_v24  ;;  %5772 = vmatmul.mubr.f32.gmra.mrb[2].mxu0 %v7021_v30 }
  0x1d   :  { %5774 = vmatprep.mubr.f32.mxu0 %v7025_v32 }
  0x1f   :  { %5761 = vmatmul.mubr.f32.vlgmr.msra.gmra.mrb[4].mxu1 %v7013_v25 }
  0x20   :  { %6418 = vmatpush3.bf16.msra.mxu1 %v7105_v18  ;;  %5763 = vmatprep.mubr.f32.mxu1 %v7030_v34 }
  0x21   :  { %5775 = vmatmul.mubr.f32.gmra.mrb[4].mxu0 %v7028_v33  ;;  %6419 = vmatprep.subr.bf16.mxu1 %v6918_v8 }
  0x22   :  { %5777 = vmatprep.mubr.f32.mxu0 %v7046_v42 }
  0x23   :  { %5764 = vmatmul.mubr.f32.gmra.mrb[6].mxu1 %v7068_v56 }
  0x24   :  { %6421 = vmatpush3.bf16.msra.mxu1 %v7120_v37  ;;  %5830 = vmatprep.mubr.msk.f32.mxu1 %vm6919_vm2, %v6920_v46 }
  0x25   :  { %5778 = vmatmul.mubr.f32.gmra.mrb[6].mxu0 %v7078_v62  ;;  %6422 = vmatprep.subr.bf16.mxu1 %v6918_v8 }
  0x26   :  { %5782 = vmatprep.mubr.f32.mxu0 %v140_v27 }
  0x27   :  { %5831 = vmatmul.mubr.f32.vlgmr.msra.gmra.mrb[8].mxu1 %v6920_v46 }
  0x28   :  { %6424 = vmatpush3.bf16.msra.mxu1 %v7137_v47  ;;  %5841 = vmatprep.mubr.msk.f32.mxu1 %vm6919_vm2, %v6920_v46 }
  0x29   :  { %5783 = vmatmul.mubr.f32.vlgmr.msra.gmra.mrb[0].mxu0 %v150_v29  ;;  %6425 = vmatprep.subr.bf16.mxu1 %v6918_v8 }
  0x2a   :  { %5785 = vmatprep.mubr.f32.mxu0 %v160_v31  ;;  %5795 = vmatpush3.msra.mxu0 %v7017_v28 }
  0x2b   :  { %5808 = vmatprep.subr.mxu0 %v6978_v9 }
  0x2c   :  { %6427 = vmatpush3.bf16.msra.mxu1 %v7145_v51 }
  0x2d   :  { %5786 = vmatmul.mubr.f32.gmra.mrb[2].mxu0 %v170_v38  ;;  %6428 = vmatprep.subr.bf16.mxu1 %v6918_v8 }
  0x2e   :  { %5788 = vmatprep.mubr.f32.mxu0 %v180_v40 }
  0x2f   :  { %5842 = vmatmul.mubr.f32.vlgmr.msra.gmra.mrb[8].mxu1 %v6920_v46 }
  0x30   :  { %6430 = vmatpush3.bf16.msra.mxu1 %v7159_v19  ;;  %5852 = vmatprep.mubr.msk.f32.mxu1 %vm6919_vm2, %v6920_v46 }
  0x31   :  { %5789 = vmatmul.mubr.f32.gmra.mrb[4].mxu0 %v190_v41  ;;  %6431 = vmatprep.subr.bf16.mxu1 %v6918_v8 }
  0x32   :  { %5791 = vmatprep.mubr.f32.mxu0 %v200_v50 }
  0x34   :  { %6433 = vmatpush3.bf16.msra.mxu1 %v7170_v21 }
  0x35   :  { %5792 = vmatmul.mubr.f32.gmra.mrb[6].mxu0 %v210_v1  ;;  %6434 = vmatprep.subr.bf16.mxu1 %v6918_v8 }
  0x36   :  { %5796 = vmatprep.mubr.f32.mxu0 %v6980_v10 }
  0x37   :  { %5853 = vmatmul.mubr.f32.vlgmr.msra.gmra.mrb[8].mxu1 %v6920_v46 }
  0x38   :  { %6436 = vmatpush3.bf16.msra.mxu1 %v7105_v18  ;;  %5863 = vmatprep.mubr.msk.f32.mxu1 %vm6919_vm2, %v6920_v46 }
  0x39   :  { %5797 = vmatmul.mubr.f32.vlgmr.msra.gmra.mrb[0].mxu0 %v6982_v11  ;;  %6437 = vmatprep.subr.bf16.mxu1 %v6918_v8 }
  0x3a   :  { %5799 = vmatprep.mubr.f32.mxu0 %v6991_v15  ;;  %5809 = vmatpush3.msra.mxu0 %v6978_v9  ;;  %v7209_v9 = vpack.c.bf16 %v926_v36, %v919_v35 }
  0x3b   :  { %6488 = vmatprep.subr.bf16.mxu0 %v6918_v8 }
  0x3c   :  { %6439 = vmatpush3.bf16.msra.mxu1 %v7120_v37 }
  0x3d   :  { %5800 = vmatmul.mubr.f32.gmra.mrb[2].mxu0 %v7005_v22  ;;  %6440 = vmatprep.subr.bf16.mxu1 %v6918_v8 }
  0x3e   :  { %5802 = vmatprep.mubr.f32.mxu0 %v7011_v24 }
  0x3f   :  { %5864 = vmatmul.mubr.f32.vlgmr.msra.gmra.mrb[8].mxu1 %v6920_v46 }
  0x40   :  { %6442 = vmatpush3.bf16.msra.mxu1 %v7198_v23  ;;  %5874 = vmatprep.mubr.msk.f32.mxu1 %vm6919_vm2, %v6920_v46 }
  0x41   :  { %5803 = vmatmul.mubr.f32.gmra.mrb[4].mxu0 %v7013_v25  ;;  %6443 = vmatprep.subr.bf16.mxu1 %v6918_v8 }
  0x42   :  { %5805 = vmatprep.mubr.f32.mxu0 %v7030_v34 }
  0x44   :  { %6445 = vmatpush3.bf16.msra.mxu1 %v7209_v9 }
  0x45   :  { %5806 = vmatmul.mubr.f32.gmra.mrb[6].mxu0 %v7068_v56  ;;  %6446 = vmatprep.subr.bf16.mxu1 %v6918_v8 }
  0x46   :  { %5810 = vmatprep.mubr.f32.mxu0 %v6980_v10  ;;  %v5412_v10 = vld [vmem:[%s7599_s3] ss:$0 sm:$0xff]  ;;  %s6921_s3 = smov 64  }
  0x47   :  { %5875 = vmatmul.mubr.f32.vlgmr.msra.gmra.mrb[8].mxu1 %v6920_v46 }
  0x48   :  { %6448 = vmatpush3.bf16.msra.mxu1 %v7105_v18  ;;  %5885 = vmatprep.mubr.msk.f32.mxu1 %vm6919_vm2, %v6920_v46 }
  0x49   :  { %5811 = vmatmul.mubr.f32.vlgmr.msra.gmra.mrb[0].mxu0 %v6982_v11  ;;  %6449 = vmatprep.subr.bf16.mxu1 %v6918_v8 }
  0x4a   :  { %5813 = vmatprep.mubr.f32.mxu0 %v6991_v15  ;;  %6490 = vmatpush3.bf16.msra.mxu0 %v7105_v18 }
  0x4b   :  { %6491 = vmatprep.subr.bf16.mxu0 %v6918_v8 }
  0x4c   :  { %6451 = vmatpush3.bf16.msra.mxu1 %v7120_v37 }
  0x4d   :  { %5814 = vmatmul.mubr.f32.gmra.mrb[2].mxu0 %v7005_v22  ;;  %6452 = vmatprep.subr.bf16.mxu1 %v6918_v8 }
  0x4e   :  { %5816 = vmatprep.mubr.f32.mxu0 %v7011_v24  ;;  %6493 = vmatpush3.bf16.msra.mxu0 %v7120_v37 }
  0x4f   :  { %5886 = vmatmul.mubr.f32.vlgmr.msra.gmra.mrb[8].mxu1 %v6920_v46  ;;  %6494 = vmatprep.subr.bf16.mxu0 %v6918_v8 }
  0x50   :  { %6454 = vmatpush3.bf16.msra.mxu1 %v7105_v18  ;;  %5896 = vmatprep.mubr.msk.f32.mxu1 %vm6919_vm2, %v6920_v46 }
  0x51   :  { %5817 = vmatmul.mubr.f32.gmra.mrb[4].mxu0 %v7013_v25  ;;  %6455 = vmatprep.subr.bf16.mxu1 %v6918_v8 }
  0x52   :  { %5819 = vmatprep.mubr.f32.mxu0 %v7030_v34 }
  0x54   :  { %6457 = vmatpush3.bf16.msra.mxu1 %v7120_v37 }
  0x55   :  { %5820 = vmatmul.mubr.f32.gmra.mrb[6].mxu0 %v7068_v56  ;;  %6458 = vmatprep.subr.bf16.mxu1 %v6918_v8 }
  0x56   :  { %5962 = vmatprep.mubr.msk.f32.mxu0 %vm6919_vm2, %v6920_v46 }
  0xe2   :  { %v5742_v11 = vpop.f32.mrb[0].mxu1 }
  0xe3   :  { %v155_v15 = vadd.f32 %v5742_v11, %v5412_v10  ;;  %v144_v22 = vpop.f32.mrb[1].mxu1 }
  0xe4   :  { %v145_v41 = vadd.f32 %v5412_v10, %v144_v22 }
  0xe6   :  { %v5745_v24 = vpop.f32.mrb[2].mxu1 }
  0xe7   :  { %v175_v25 = vadd.f32 %v5745_v24, %v5412_v10  ;;  %v164_v27 = vpop.f32.mrb[3].mxu1 }
  0xe8   :  { %v165_v28 = vadd.f32 %v5412_v10, %v164_v27 }
  0xf2   :  { %v5762_v29 = vpop.f32.mrb[4].mxu1 }
  0xf3   :  { %v6750_v30 = vadd.f32 %v5762_v29, %v5412_v10  ;;  %v314_v31 = vpop.f32.mrb[5].mxu1 }
  0xf4   :  { %v6752_v32 = vadd.f32 %v5412_v10, %v314_v31 }
  0xf6   :  { %v5765_v33 = vpop.f32.mrb[6].mxu1 }
  0xf7   :  { %v6754_v34 = vadd.f32 %v5765_v33, %v5412_v10  ;;  %v326_v38 = vpop.f32.mrb[7].mxu1 }
  0xf8   :  { %v6756_v40 = vadd.f32 %v5412_v10, %v326_v38 }
 0x11c   :  { %v5812_v42 = vpop.f32.mrb[0].mxu0 }
 0x11d   :  { %v7250_v50 = vadd.f32 %v5812_v42, %v155_v15  ;;  %v773_v52 = vpop.f32.mrb[1].mxu0 }
 0x11e   :  { %v6745_v53 = vadd.f32 %v773_v52, %v145_v41 }
 0x120   :  { %v5815_v54 = vpop.f32.mrb[2].mxu0 }
 0x121   :  { %v7252_v55 = vadd.f32 %v5815_v54, %v175_v25  ;;  %v785_v56 = vpop.f32.mrb[3].mxu0 }
 0x122   :  { %v7254_v57 = vadd.f32 %v785_v56, %v165_v28  ;;  %v1304_v58 = vpop.f32.mrb[8].mxu1 }
 0x123   :  { %v1308_v59 = vadd.f32 %v6745_v53, %v1304_v58  ;;  %v5887_v60 = vpop.f32.mrb[9].mxu1 }
 0x124   :  { %v5818_v61 = vpop.f32.mrb[4].mxu0 }
 0x125   :  { %6886 = vtanh.f32 %v1308_v59  ;;  %v7256_v62 = vadd.f32 %v6750_v30, %v5818_v61  ;;  %v797_v63 = vpop.f32.mrb[5].mxu0 }
 0x126   :  { %v7258_v0 = vadd.f32 %v6752_v32, %v797_v63 }
 0x128   :  { %v5821_v1 = vpop.f32.mrb[6].mxu0 }
 0x129   :  { %v7260_v2 = vadd.f32 %v6754_v34, %v5821_v1  ;;  %v809_v3 = vpop.f32.mrb[7].mxu0 }
 0x12a   :  { %v7262_v4 = vadd.f32 %v6756_v40, %v809_v3 }
 0x12f   :  { %v6887_v5 = vpop.eup %6886 }
 0x130   :  { %1314 = vrot.lane.b32.xlu0 %v6887_v5, %s6921_s3  ;;  %v1310_v6 = vmul.f32 0.5, %v6887_v5 }
 0x132   :  { %v1311_v7 = vadd.f32 0.5, %v1310_v6 }
 0x134   :  { %v1312_v14 = vmul.f32 0.0, %v1311_v7 }
 0x1a2   :  { %v1315_v12 = vpop.permute.xlu0 %1314 }
 0x1a3   :  { %v1317_v13 = vmul.f32 %v1315_v12, %v1311_v7 }
 0x1a5   :  { %1319 = vrot.lane.b32.xlu0 %v1317_v13, %s6922_s22 }
 0x217   :  { %v1320_v16 = vpop.permute.xlu0 %1319 }
 0x218   :  { %v1322_v17 = vadd.f32 %v1320_v16, %v1312_v14 }
 0x21a   :  { %6888 = vtanh.f32 %v1322_v17 }
 0x224   :  { %v6889_v20 = vpop.eup %6888 }
 0x225   :  { %1325 = vrot.lane.b32.xlu1 %v6889_v20, %s6921_s3 }
 0x297   :  { %v1326_v26 = vpop.permute.xlu1 %1325 }
 0x298   :  { %v1328_v35 = vmul.f32 %v1326_v26, %v1311_v7 }
 0x29a   :  { %1330 = vrot.lane.b32.xlu1 %v1328_v35, %s6922_s22 }
 0x30c   :  { %v1331_v36 = vpop.permute.xlu1 %1330 }
 0x30d   :  { %v1332_v39 = vsel %vm819_vm3, %v1331_v36, 0 }
 0x30e   :  { %v1403_v43 = vand.u32 4294901760, %v1332_v39 }
 0x310   :  { %v1404_v44 = vsub.f32 %v1332_v39, %v1403_v43 }
 0x312   :  { %v1405_v45 = vand.u32 4294901760, %v1404_v44 }
 0x314   :  { %v1406_v48 = vsub.f32 %v1404_v44, %v1405_v45 }
 0x316   :  { %v1407_v49 = vand.u32 4294901760, %v1406_v48 }
 0x318   :  { %5897 = vmatmul.mubr.f32.vlgmr.msra.gmra.mrb[10].mxu1 %v1407_v49 }
 0x319   :  { %6460 = vmatpush3.bf16.msra.mxu1 %v7137_v47  ;;  %5907 = vmatprep.mubr.msk.f32.mxu1 %vm6919_vm2, %v6920_v46 }
 0x31a   :  { %6461 = vmatprep.subr.bf16.mxu1 %v6918_v8 }
 0x31d   :  { %6463 = vmatpush3.bf16.msra.mxu1 %v7145_v51 }
 0x31e   :  { %6464 = vmatprep.subr.bf16.mxu1 %v6918_v8 }
 0x320   :  { %5908 = vmatmul.mubr.f32.vlgmr.msra.gmra.mrb[10].mxu1 %v1403_v43 }
 0x321   :  { %6466 = vmatpush3.bf16.msra.mxu1 %v7159_v19  ;;  %5918 = vmatprep.mubr.msk.f32.mxu1 %vm6919_vm2, %v6920_v46 }
 0x322   :  { %6467 = vmatprep.subr.bf16.mxu1 %v6918_v8 }
 0x325   :  { %6469 = vmatpush3.bf16.msra.mxu1 %v7170_v21 }
 0x326   :  { %6470 = vmatprep.subr.bf16.mxu1 %v6918_v8 }
 0x328   :  { %5919 = vmatmul.mubr.f32.vlgmr.msra.gmra.mrb[10].mxu1 %v1404_v44 }
 0x329   :  { %6472 = vmatpush3.bf16.msra.mxu1 %v7105_v18  ;;  %5929 = vmatprep.mubr.msk.f32.mxu1 %vm6919_vm2, %v6920_v46 }
 0x32a   :  { %6473 = vmatprep.subr.bf16.mxu1 %v6918_v8 }
 0x32d   :  { %6475 = vmatpush3.bf16.msra.mxu1 %v7120_v37 }
 0x32e   :  { %6476 = vmatprep.subr.bf16.mxu1 %v6918_v8 }
 0x330   :  { %5930 = vmatmul.mubr.f32.vlgmr.msra.gmra.mrb[10].mxu1 %v1405_v45 }
 0x331   :  { %6478 = vmatpush3.bf16.msra.mxu1 %v7198_v23  ;;  %5940 = vmatprep.mubr.msk.f32.mxu1 %vm6919_vm2, %v6920_v46 }
 0x332   :  { %6479 = vmatprep.subr.bf16.mxu1 %v6918_v8 }
 0x335   :  { %6481 = vmatpush3.bf16.msra.mxu1 %v7209_v9 }
 0x336   :  { %6482 = vmatprep.subr.bf16.mxu1 %v6918_v8 }
 0x338   :  { %5941 = vmatmul.mubr.f32.vlgmr.msra.gmra.mrb[10].mxu1 %v1403_v43 }
 0x339   :  { %6484 = vmatpush3.bf16.msra.mxu1 %v7105_v18  ;;  %5951 = vmatprep.mubr.msk.f32.mxu1 %vm6919_vm2, %v6920_v46 }
 0x33a   :  { %6485 = vmatprep.subr.bf16.mxu1 %v6918_v8 }
 0x33d   :  { %6487 = vmatpush3.bf16.msra.mxu1 %v7120_v37 }
 0x33e   :  { %6524 = vmatprep.subr.bf16.mxu1 %v6918_v8 }
 0x340   :  { %5952 = vmatmul.mubr.f32.vlgmr.msra.gmra.mrb[10].mxu1 %v1403_v43 }
 0x341   :  { %6526 = vmatpush3.bf16.msra.mxu1 %v7105_v18  ;;  %6028 = vmatprep.mubr.msk.f32.mxu1 %vm6919_vm2, %v6920_v46 }
 0x342   :  { %6527 = vmatprep.subr.bf16.mxu1 %v6918_v8 }
 0x345   :  { %6529 = vmatpush3.bf16.msra.mxu1 %v7120_v37 }
 0x346   :  { %6530 = vmatprep.subr.bf16.mxu1 %v6918_v8 }
 0x413   :  { %v1815_v10 = vpop.f32.mrb[10].mxu1 }
 0x414   :  { %v1819_v11 = vadd.f32 %v7250_v50, %v1815_v10  ;;  %v5953_v15 = vpop.f32.mrb[11].mxu1 }
 0x416   :  { %6890 = vtanh.f32 %v1819_v11 }
 0x420   :  { %v6891_v22 = vpop.eup %6890 }
 0x421   :  { %1825 = vrot.lane.b32.xlu0 %v6891_v22, %s6921_s3  ;;  %v1821_v24 = vmul.f32 0.5, %v6891_v22 }
 0x423   :  { %v1822_v25 = vadd.f32 0.5, %v1821_v24 }
 0x425   :  { %v1823_v29 = vmul.f32 %v1822_v25, %v1322_v17 }
 0x493   :  { %v1826_v27 = vpop.permute.xlu0 %1825 }
 0x494   :  { %v1828_v28 = vmul.f32 %v1826_v27, %v1822_v25 }
 0x496   :  { %1830 = vrot.lane.b32.xlu1 %v1828_v28, %s6922_s22 }
 0x508   :  { %v1831_v30 = vpop.permute.xlu1 %1830 }
 0x509   :  { %v1833_v31 = vadd.f32 %v1831_v30, %v1823_v29 }
 0x50b   :  { %6892 = vtanh.f32 %v1833_v31 }
 0x515   :  { %v6893_v32 = vpop.eup %6892 }
 0x516   :  { %1836 = vrot.lane.b32.xlu0 %v6893_v32, %s6921_s3 }
 0x588   :  { %v1837_v33 = vpop.permute.xlu0 %1836 }
 0x589   :  { %v1839_v34 = vmul.f32 %v1837_v33, %v1822_v25 }
 0x58b   :  { %1841 = vrot.lane.b32.xlu1 %v1839_v34, %s6922_s22 }
 0x5fd   :  { %v1842_v38 = vpop.permute.xlu1 %1841 }
 0x5fe   :  { %v1843_v40 = vsel %vm819_vm3, %v1842_v38, 0 }
 0x5ff   :  { %v1914_v41 = vand.u32 4294901760, %v1843_v40 }
 0x601   :  { %v1915_v42 = vsub.f32 %v1843_v40, %v1914_v41 }
 0x603   :  { %v1916_v50 = vand.u32 4294901760, %v1915_v42 }
 0x605   :  { %v1917_v52 = vsub.f32 %v1915_v42, %v1916_v50 }
 0x607   :  { %v1918_v53 = vand.u32 4294901760, %v1917_v52 }
 0x609   :  { %5963 = vmatmul.mubr.f32.vlgmr.msra.gmra.mrb[8].mxu0 %v1918_v53 }
 0x60a   :  { %6496 = vmatpush3.bf16.msra.mxu0 %v7137_v47  ;;  %5973 = vmatprep.mubr.msk.f32.mxu0 %vm6919_vm2, %v6920_v46 }
 0x60b   :  { %6497 = vmatprep.subr.bf16.mxu0 %v6918_v8 }
 0x60e   :  { %6499 = vmatpush3.bf16.msra.mxu0 %v7145_v51 }
 0x60f   :  { %6500 = vmatprep.subr.bf16.mxu0 %v6918_v8 }
 0x611   :  { %5974 = vmatmul.mubr.f32.vlgmr.msra.gmra.mrb[8].mxu0 %v1914_v41 }
 0x612   :  { %6502 = vmatpush3.bf16.msra.mxu0 %v7159_v19  ;;  %5984 = vmatprep.mubr.msk.f32.mxu0 %vm6919_vm2, %v6920_v46 }
 0x613   :  { %6503 = vmatprep.subr.bf16.mxu0 %v6918_v8 }
 0x616   :  { %6505 = vmatpush3.bf16.msra.mxu0 %v7170_v21 }
 0x617   :  { %6506 = vmatprep.subr.bf16.mxu0 %v6918_v8 }
 0x619   :  { %5985 = vmatmul.mubr.f32.vlgmr.msra.gmra.mrb[8].mxu0 %v1915_v42 }
 0x61a   :  { %6508 = vmatpush3.bf16.msra.mxu0 %v7105_v18  ;;  %5995 = vmatprep.mubr.msk.f32.mxu0 %vm6919_vm2, %v6920_v46 }
 0x61b   :  { %6509 = vmatprep.subr.bf16.mxu0 %v6918_v8 }
 0x61e   :  { %6511 = vmatpush3.bf16.msra.mxu0 %v7120_v37 }
 0x61f   :  { %6512 = vmatprep.subr.bf16.mxu0 %v6918_v8 }
 0x621   :  { %5996 = vmatmul.mubr.f32.vlgmr.msra.gmra.mrb[8].mxu0 %v1916_v50 }
 0x622   :  { %6514 = vmatpush3.bf16.msra.mxu0 %v7198_v23  ;;  %6006 = vmatprep.mubr.msk.f32.mxu0 %vm6919_vm2, %v6920_v46 }
 0x623   :  { %6515 = vmatprep.subr.bf16.mxu0 %v6918_v8 }
 0x626   :  { %6517 = vmatpush3.bf16.msra.mxu0 %v7209_v9 }
 0x627   :  { %6518 = vmatprep.subr.bf16.mxu0 %v6918_v8 }
 0x629   :  { %6007 = vmatmul.mubr.f32.vlgmr.msra.gmra.mrb[8].mxu0 %v1914_v41 }
 0x62a   :  { %6520 = vmatpush3.bf16.msra.mxu0 %v7105_v18  ;;  %6017 = vmatprep.mubr.msk.f32.mxu0 %vm6919_vm2, %v6920_v46 }
 0x62b   :  { %6521 = vmatprep.subr.bf16.mxu0 %v6918_v8 }
 0x62e   :  { %6523 = vmatpush3.bf16.msra.mxu0 %v7120_v37 }
 0x62f   :  { %6560 = vmatprep.subr.bf16.mxu0 %v6918_v8 }
 0x631   :  { %6018 = vmatmul.mubr.f32.vlgmr.msra.gmra.mrb[8].mxu0 %v1914_v41 }
 0x632   :  { %6562 = vmatpush3.bf16.msra.mxu0 %v7105_v18  ;;  %6094 = vmatprep.mubr.msk.f32.mxu0 %vm6919_vm2, %v6920_v46 }
 0x633   :  { %6563 = vmatprep.subr.bf16.mxu0 %v6918_v8 }
 0x636   :  { %6565 = vmatpush3.bf16.msra.mxu0 %v7120_v37 }
 0x637   :  { %6566 = vmatprep.subr.bf16.mxu0 %v6918_v8 }
 0x704   :  { %v2326_v54 = vpop.f32.mrb[8].mxu0 }
 0x705   :  { %v2330_v56 = vadd.f32 %v7254_v57, %v2326_v54  ;;  %v6019_v58 = vpop.f32.mrb[9].mxu0 }
 0x707   :  { %6894 = vtanh.f32 %v2330_v56 }
 0x711   :  { %v6895_v59 = vpop.eup %6894 }
 0x712   :  { %2336 = vrot.lane.b32.xlu0 %v6895_v59, %s6921_s3  ;;  %v2332_v60 = vmul.f32 0.5, %v6895_v59 }
 0x714   :  { %v2333_v61 = vadd.f32 0.5, %v2332_v60 }
 0x716   :  { %v2334_v3 = vmul.f32 %v2333_v61, %v1833_v31 }
 0x784   :  { %v2337_v63 = vpop.permute.xlu0 %2336 }
 0x785   :  { %v2339_v1 = vmul.f32 %v2337_v63, %v2333_v61 }
 0x787   :  { %2341 = vrot.lane.b32.xlu1 %v2339_v1, %s6922_s22 }
 0x7f9   :  { %v2342_v5 = vpop.permute.xlu1 %2341 }
 0x7fa   :  { %v2344_v6 = vadd.f32 %v2342_v5, %v2334_v3 }
 0x7fc   :  { %6896 = vtanh.f32 %v2344_v6 }
 0x806   :  { %v6897_v7 = vpop.eup %6896 }
 0x807   :  { %2347 = vrot.lane.b32.xlu0 %v6897_v7, %s6921_s3 }
 0x879   :  { %v2348_v12 = vpop.permute.xlu0 %2347 }
 0x87a   :  { %v2350_v57 = vmul.f32 %v2348_v12, %v2333_v61 }
 0x87c   :  { %2352 = vrot.lane.b32.xlu1 %v2350_v57, %s6922_s22 }
 0x8ee   :  { %v2353_v13 = vpop.permute.xlu1 %2352 }
 0x8ef   :  { %v2354_v14 = vsel %vm819_vm3, %v2353_v13, 0 }
 0x8f0   :  { %v2425_v16 = vand.u32 4294901760, %v2354_v14 }
 0x8f2   :  { %v2426_v17 = vsub.f32 %v2354_v14, %v2425_v16 }
 0x8f4   :  { %v2427_v20 = vand.u32 4294901760, %v2426_v17 }
 0x8f6   :  { %v2428_v26 = vsub.f32 %v2426_v17, %v2427_v20 }
 0x8f8   :  { %v2429_v35 = vand.u32 4294901760, %v2428_v26 }
 0x8fa   :  { %6029 = vmatmul.mubr.f32.vlgmr.msra.gmra.mrb[12].mxu1 %v2429_v35 }
 0x8fb   :  { %6532 = vmatpush3.bf16.msra.mxu1 %v7137_v47  ;;  %6039 = vmatprep.mubr.msk.f32.mxu1 %vm6919_vm2, %v6920_v46 }
 0x8fc   :  { %6533 = vmatprep.subr.bf16.mxu1 %v6918_v8 }
 0x8ff   :  { %6535 = vmatpush3.bf16.msra.mxu1 %v7145_v51 }
 0x900   :  { %6536 = vmatprep.subr.bf16.mxu1 %v6918_v8 }
 0x902   :  { %6040 = vmatmul.mubr.f32.vlgmr.msra.gmra.mrb[12].mxu1 %v2425_v16 }
 0x903   :  { %6538 = vmatpush3.bf16.msra.mxu1 %v7159_v19  ;;  %6050 = vmatprep.mubr.msk.f32.mxu1 %vm6919_vm2, %v6920_v46 }
 0x904   :  { %6539 = vmatprep.subr.bf16.mxu1 %v6918_v8 }
 0x907   :  { %6541 = vmatpush3.bf16.msra.mxu1 %v7170_v21 }
 0x908   :  { %6542 = vmatprep.subr.bf16.mxu1 %v6918_v8 }
 0x90a   :  { %6051 = vmatmul.mubr.f32.vlgmr.msra.gmra.mrb[12].mxu1 %v2426_v17 }
 0x90b   :  { %6544 = vmatpush3.bf16.msra.mxu1 %v7105_v18  ;;  %6061 = vmatprep.mubr.msk.f32.mxu1 %vm6919_vm2, %v6920_v46 }
 0x90c   :  { %6545 = vmatprep.subr.bf16.mxu1 %v6918_v8 }
 0x90f   :  { %6547 = vmatpush3.bf16.msra.mxu1 %v7120_v37 }
 0x910   :  { %6548 = vmatprep.subr.bf16.mxu1 %v6918_v8 }
 0x912   :  { %6062 = vmatmul.mubr.f32.vlgmr.msra.gmra.mrb[12].mxu1 %v2427_v20 }
 0x913   :  { %6550 = vmatpush3.bf16.msra.mxu1 %v7198_v23  ;;  %6072 = vmatprep.mubr.msk.f32.mxu1 %vm6919_vm2, %v6920_v46 }
 0x914   :  { %6551 = vmatprep.subr.bf16.mxu1 %v6918_v8 }
 0x917   :  { %6553 = vmatpush3.bf16.msra.mxu1 %v7209_v9 }
 0x918   :  { %6554 = vmatprep.subr.bf16.mxu1 %v6918_v8 }
 0x91a   :  { %6073 = vmatmul.mubr.f32.vlgmr.msra.gmra.mrb[12].mxu1 %v2425_v16 }
 0x91b   :  { %6556 = vmatpush3.bf16.msra.mxu1 %v7105_v18  ;;  %6083 = vmatprep.mubr.msk.f32.mxu1 %vm6919_vm2, %v6920_v46 }
 0x91c   :  { %6557 = vmatprep.subr.bf16.mxu1 %v6918_v8 }
 0x91f   :  { %6559 = vmatpush3.bf16.msra.mxu1 %v7120_v37 }
 0x920   :  { %6596 = vmatprep.subr.bf16.mxu1 %v6918_v8 }
 0x922   :  { %6084 = vmatmul.mubr.f32.vlgmr.msra.gmra.mrb[12].mxu1 %v2425_v16 }
 0x923   :  { %6598 = vmatpush3.bf16.msra.mxu1 %v7105_v18  ;;  %6160 = vmatprep.mubr.msk.f32.mxu1 %vm6919_vm2, %v6920_v46 }
 0x924   :  { %6599 = vmatprep.subr.bf16.mxu1 %v6918_v8 }
 0x927   :  { %6601 = vmatpush3.bf16.msra.mxu1 %v7120_v37 }
 0x928   :  { %6602 = vmatprep.subr.bf16.mxu1 %v6918_v8 }
 0x9f5   :  { %v2837_v36 = vpop.f32.mrb[12].mxu1 }
 0x9f6   :  { %v2841_v39 = vadd.f32 %v7252_v55, %v2837_v36  ;;  %v6085_v43 = vpop.f32.mrb[13].mxu1 }
 0x9f8   :  { %6898 = vtanh.f32 %v2841_v39 }
 0xa02   :  { %v6899_v44 = vpop.eup %6898 }
 0xa03   :  { %2847 = vrot.lane.b32.xlu0 %v6899_v44, %s6921_s3  ;;  %v2843_v45 = vmul.f32 0.5, %v6899_v44 }
 0xa05   :  { %v2844_v48 = vadd.f32 0.5, %v2843_v45 }
 0xa07   :  { %v2845_v11 = vmul.f32 %v2844_v48, %v2344_v6 }
 0xa75   :  { %v2848_v49 = vpop.permute.xlu0 %2847 }
 0xa76   :  { %v2850_v10 = vmul.f32 %v2848_v49, %v2844_v48 }
 0xa78   :  { %2852 = vrot.lane.b32.xlu1 %v2850_v10, %s6922_s22 }
 0xaea   :  { %v2853_v15 = vpop.permute.xlu1 %2852 }
 0xaeb   :  { %v2855_v22 = vadd.f32 %v2853_v15, %v2845_v11 }
 0xaed   :  { %6900 = vtanh.f32 %v2855_v22 }
 0xaf7   :  { %v6901_v24 = vpop.eup %6900 }
 0xaf8   :  { %2858 = vrot.lane.b32.xlu0 %v6901_v24, %s6921_s3 }
 0xb6a   :  { %v2859_v25 = vpop.permute.xlu0 %2858 }
 0xb6b   :  { %v2861_v55 = vmul.f32 %v2859_v25, %v2844_v48 }
 0xb6d   :  { %2863 = vrot.lane.b32.xlu1 %v2861_v55, %s6922_s22 }
 0xbdf   :  { %v2864_v27 = vpop.permute.xlu1 %2863 }
 0xbe0   :  { %v2865_v28 = vsel %vm819_vm3, %v2864_v27, 0 }
 0xbe1   :  { %v2936_v29 = vand.u32 4294901760, %v2865_v28 }
 0xbe3   :  { %v2937_v30 = vsub.f32 %v2865_v28, %v2936_v29 }
 0xbe5   :  { %v2938_v31 = vand.u32 4294901760, %v2937_v30 }
 0xbe7   :  { %v2939_v32 = vsub.f32 %v2937_v30, %v2938_v31 }
 0xbe9   :  { %v2940_v33 = vand.u32 4294901760, %v2939_v32 }
 0xbeb   :  { %6095 = vmatmul.mubr.f32.vlgmr.msra.gmra.mrb[10].mxu0 %v2940_v33 }
 0xbec   :  { %6568 = vmatpush3.bf16.msra.mxu0 %v7137_v47  ;;  %6105 = vmatprep.mubr.msk.f32.mxu0 %vm6919_vm2, %v6920_v46 }
 0xbed   :  { %6569 = vmatprep.subr.bf16.mxu0 %v6918_v8 }
 0xbf0   :  { %6571 = vmatpush3.bf16.msra.mxu0 %v7145_v51 }
 0xbf1   :  { %6572 = vmatprep.subr.bf16.mxu0 %v6918_v8 }
 0xbf3   :  { %6106 = vmatmul.mubr.f32.vlgmr.msra.gmra.mrb[10].mxu0 %v2936_v29 }
 0xbf4   :  { %6574 = vmatpush3.bf16.msra.mxu0 %v7159_v19  ;;  %6116 = vmatprep.mubr.msk.f32.mxu0 %vm6919_vm2, %v6920_v46 }
 0xbf5   :  { %6575 = vmatprep.subr.bf16.mxu0 %v6918_v8 }
 0xbf8   :  { %6577 = vmatpush3.bf16.msra.mxu0 %v7170_v21 }
 0xbf9   :  { %6578 = vmatprep.subr.bf16.mxu0 %v6918_v8 }
 0xbfb   :  { %6117 = vmatmul.mubr.f32.vlgmr.msra.gmra.mrb[10].mxu0 %v2937_v30 }
 0xbfc   :  { %6580 = vmatpush3.bf16.msra.mxu0 %v7105_v18  ;;  %6127 = vmatprep.mubr.msk.f32.mxu0 %vm6919_vm2, %v6920_v46 }
 0xbfd   :  { %6581 = vmatprep.subr.bf16.mxu0 %v6918_v8 }
 0xc00   :  { %6583 = vmatpush3.bf16.msra.mxu0 %v7120_v37 }
 0xc01   :  { %6584 = vmatprep.subr.bf16.mxu0 %v6918_v8 }
 0xc03   :  { %6128 = vmatmul.mubr.f32.vlgmr.msra.gmra.mrb[10].mxu0 %v2938_v31 }
 0xc04   :  { %6586 = vmatpush3.bf16.msra.mxu0 %v7198_v23  ;;  %6138 = vmatprep.mubr.msk.f32.mxu0 %vm6919_vm2, %v6920_v46 }
 0xc05   :  { %6587 = vmatprep.subr.bf16.mxu0 %v6918_v8 }
 0xc08   :  { %6589 = vmatpush3.bf16.msra.mxu0 %v7209_v9 }
 0xc09   :  { %6590 = vmatprep.subr.bf16.mxu0 %v6918_v8 }
 0xc0b   :  { %6139 = vmatmul.mubr.f32.vlgmr.msra.gmra.mrb[10].mxu0 %v2936_v29 }
 0xc0c   :  { %6592 = vmatpush3.bf16.msra.mxu0 %v7105_v18  ;;  %6149 = vmatprep.mubr.msk.f32.mxu0 %vm6919_vm2, %v6920_v46 }
 0xc0d   :  { %6593 = vmatprep.subr.bf16.mxu0 %v6918_v8 }
 0xc10   :  { %6595 = vmatpush3.bf16.msra.mxu0 %v7120_v37 }
 0xc11   :  { %6632 = vmatprep.subr.bf16.mxu0 %v6918_v8 }
 0xc13   :  { %6150 = vmatmul.mubr.f32.vlgmr.msra.gmra.mrb[10].mxu0 %v2936_v29 }
 0xc14   :  { %6634 = vmatpush3.bf16.msra.mxu0 %v7105_v18  ;;  %6226 = vmatprep.mubr.msk.f32.mxu0 %vm6919_vm2, %v6920_v46 }
 0xc15   :  { %6635 = vmatprep.subr.bf16.mxu0 %v6918_v8 }
 0xc18   :  { %6637 = vmatpush3.bf16.msra.mxu0 %v7120_v37 }
 0xc19   :  { %6638 = vmatprep.subr.bf16.mxu0 %v6918_v8 }
 0xce6   :  { %v3348_v34 = vpop.f32.mrb[10].mxu0 }
 0xce7   :  { %v3352_v38 = vadd.f32 %v7258_v0, %v3348_v34  ;;  %v6151_v40 = vpop.f32.mrb[11].mxu0 }
 0xce9   :  { %6902 = vtanh.f32 %v3352_v38 }
 0xcf3   :  { %v6903_v41 = vpop.eup %6902 }
 0xcf4   :  { %3358 = vrot.lane.b32.xlu0 %v6903_v41, %s6921_s3  ;;  %v3354_v42 = vmul.f32 0.5, %v6903_v41 }
 0xcf6   :  { %v3355_v50 = vadd.f32 0.5, %v3354_v42 }
 0xcf8   :  { %v3356_v54 = vmul.f32 %v3355_v50, %v2855_v22 }
 0xd66   :  { %v3359_v52 = vpop.permute.xlu0 %3358 }
 0xd67   :  { %v3361_v53 = vmul.f32 %v3359_v52, %v3355_v50 }
 0xd69   :  { %3363 = vrot.lane.b32.xlu1 %v3361_v53, %s6922_s22 }
 0xddb   :  { %v3364_v56 = vpop.permute.xlu1 %3363 }
 0xddc   :  { %v3366_v58 = vadd.f32 %v3364_v56, %v3356_v54 }
 0xdde   :  { %6904 = vtanh.f32 %v3366_v58 }
 0xde8   :  { %v6905_v59 = vpop.eup %6904 }
 0xde9   :  { %3369 = vrot.lane.b32.xlu0 %v6905_v59, %s6921_s3 }
 0xe5b   :  { %v3370_v60 = vpop.permute.xlu0 %3369 }
 0xe5c   :  { %v3372_v0 = vmul.f32 %v3370_v60, %v3355_v50 }
 0xe5e   :  { %3374 = vrot.lane.b32.xlu1 %v3372_v0, %s6922_s22 }
 0xed0   :  { %v3375_v61 = vpop.permute.xlu1 %3374 }
 0xed1   :  { %v3376_v63 = vsel %vm819_vm3, %v3375_v61, 0  ;;  %v4907_v61 = vld [vmem:[%s7600_s4 + $0x8] sm:$0xff] }
 0xed2   :  { %v3447_v1 = vand.u32 4294901760, %v3376_v63 }
 0xed4   :  { %v3448_v3 = vsub.f32 %v3376_v63, %v3447_v1 }
 0xed6   :  { %v3449_v5 = vand.u32 4294901760, %v3448_v3 }
 0xed8   :  { %v3450_v6 = vsub.f32 %v3448_v3, %v3449_v5 }
 0xeda   :  { %v3451_v7 = vand.u32 4294901760, %v3450_v6 }
 0xedc   :  { %6161 = vmatmul.mubr.f32.vlgmr.msra.gmra.mrb[14].mxu1 %v3451_v7  ;;  %v4908_v7 = vld [vmem:[%s7600_s4 + $0x10] sm:$0xff] }
 0xedd   :  { %6604 = vmatpush3.bf16.msra.mxu1 %v7137_v47  ;;  %6171 = vmatprep.mubr.msk.f32.mxu1 %vm6919_vm2, %v6920_v46 }
 0xede   :  { %6605 = vmatprep.subr.bf16.mxu1 %v6918_v8 }
 0xee1   :  { %6607 = vmatpush3.bf16.msra.mxu1 %v7145_v51 }
 0xee2   :  { %6608 = vmatprep.subr.bf16.mxu1 %v6918_v8 }
 0xee4   :  { %6172 = vmatmul.mubr.f32.vlgmr.msra.gmra.mrb[14].mxu1 %v3447_v1 }
 0xee5   :  { %6610 = vmatpush3.bf16.msra.mxu1 %v7159_v19  ;;  %6182 = vmatprep.mubr.msk.f32.mxu1 %vm6919_vm2, %v6920_v46 }
 0xee6   :  { %6611 = vmatprep.subr.bf16.mxu1 %v6918_v8 }
 0xee9   :  { %6613 = vmatpush3.bf16.msra.mxu1 %v7170_v21 }
 0xeea   :  { %6614 = vmatprep.subr.bf16.mxu1 %v6918_v8 }
 0xeec   :  { %6183 = vmatmul.mubr.f32.vlgmr.msra.gmra.mrb[14].mxu1 %v3448_v3 }
 0xeed   :  { %6616 = vmatpush3.bf16.msra.mxu1 %v7105_v18  ;;  %6193 = vmatprep.mubr.msk.f32.mxu1 %vm6919_vm2, %v6920_v46 }
 0xeee   :  { %6617 = vmatprep.subr.bf16.mxu1 %v6918_v8 }
 0xef1   :  { %6619 = vmatpush3.bf16.msra.mxu1 %v7120_v37 }
 0xef2   :  { %6620 = vmatprep.subr.bf16.mxu1 %v6918_v8 }
 0xef4   :  { %6194 = vmatmul.mubr.f32.vlgmr.msra.gmra.mrb[14].mxu1 %v3449_v5 }
 0xef5   :  { %6622 = vmatpush3.bf16.msra.mxu1 %v7198_v23  ;;  %6204 = vmatprep.mubr.msk.f32.mxu1 %vm6919_vm2, %v6920_v46 }
 0xef6   :  { %6623 = vmatprep.subr.bf16.mxu1 %v6918_v8 }
 0xef9   :  { %6625 = vmatpush3.bf16.msra.mxu1 %v7209_v9 }
 0xefa   :  { %6626 = vmatprep.subr.bf16.mxu1 %v6918_v8 }
 0xefc   :  { %6205 = vmatmul.mubr.f32.vlgmr.msra.gmra.mrb[14].mxu1 %v3447_v1 }
 0xefd   :  { %6628 = vmatpush3.bf16.msra.mxu1 %v7105_v18  ;;  %6215 = vmatprep.mubr.msk.f32.mxu1 %vm6919_vm2, %v6920_v46 }
 0xefe   :  { %6629 = vmatprep.subr.bf16.mxu1 %v6918_v8 }
 0xf01   :  { %6631 = vmatpush3.bf16.msra.mxu1 %v7120_v37 }
 0xf02   :  { %6668 = vmatprep.subr.bf16.mxu1 %v6918_v8 }
 0xf04   :  { %6216 = vmatmul.mubr.f32.vlgmr.msra.gmra.mrb[14].mxu1 %v3447_v1  ;;  %v4926_v1 = vand.u32 4294901760, %v4907_v61 }
 0xf05   :  { %6670 = vmatpush3.bf16.msra.mxu1 %v7105_v18  ;;  %6292 = vmatprep.mubr.msk.f32.mxu1 %vm6919_vm2, %v6920_v46 }
 0xf06   :  { %6671 = vmatprep.subr.bf16.mxu1 %v6918_v8  ;;  %v5010_v6 = vsub.f32 %v4907_v61, %v4926_v1 }
 0xf09   :  { %6673 = vmatpush3.bf16.msra.mxu1 %v7120_v37 }
 0xf0a   :  { %6674 = vmatprep.subr.bf16.mxu1 %v6918_v8 }
 0xfd7   :  { %v3859_v12 = vpop.f32.mrb[14].mxu1 }
 0xfd8   :  { %v3863_v57 = vadd.f32 %v7256_v62, %v3859_v12  ;;  %v6217_v13 = vpop.f32.mrb[15].mxu1  ;;  %v4909_v12 = vld [vmem:[%s7600_s4 + $0x18] sm:$0xff] }
 0xfd9   :  { %v4932_v13 = vand.u32 4294901760, %v4909_v12 }
 0xfda   :  { %6906 = vtanh.f32 %v3863_v57  ;;  %v4929_v57 = vand.u32 4294901760, %v4908_v7 }
 0xfe4   :  { %v6907_v14 = vpop.eup %6906 }
 0xfe5   :  { %3869 = vrot.lane.b32.xlu0 %v6907_v14, %s6921_s3  ;;  %v3865_v16 = vmul.f32 0.5, %v6907_v14 }
 0xfe7   :  { %v3866_v17 = vadd.f32 0.5, %v3865_v16  ;;  %v5011_v16 = vand.u32 4294901760, %v5010_v6 }
 0xfe9   :  { %v3867_v35 = vmul.f32 %v3866_v17, %v3366_v58 }
0x1057   :  { %v3870_v20 = vpop.permute.xlu0 %3869 }
0x1058   :  { %v3872_v26 = vmul.f32 %v3870_v20, %v3866_v17  ;;  %v5017_v20 = vsub.f32 %v4908_v7, %v4929_v57 }
0x105a   :  { %3874 = vrot.lane.b32.xlu1 %v3872_v26, %s6922_s22  ;;  %v5024_v26 = vsub.f32 %v4909_v12, %v4932_v13 }
0x10cc   :  { %v3875_v36 = vpop.permute.xlu1 %3874 }
0x10cd   :  { %v3877_v39 = vadd.f32 %v3875_v36, %v3867_v35  ;;  %v5012_v36 = vsub.f32 %v5010_v6, %v5011_v16 }
0x10cf   :  { %6908 = vtanh.f32 %v3877_v39 }
0x10d9   :  { %v6909_v43 = vpop.eup %6908 }
0x10da   :  { %3880 = vrot.lane.b32.xlu0 %v6909_v43, %s6921_s3  ;;  %v5018_v43 = vand.u32 4294901760, %v5017_v20 }
0x114c   :  { %v3881_v44 = vpop.permute.xlu0 %3880 }
0x114d   :  { %v3883_v62 = vmul.f32 %v3881_v44, %v3866_v17  ;;  %v6708_v17 = vpack.c.bf16 %v4932_v13, %v4929_v57  ;;  %v5025_v44 = vand.u32 4294901760, %v5024_v26 }
0x114f   :  { %3885 = vrot.lane.b32.xlu1 %v3883_v62, %s6922_s22 }
0x11c1   :  { %v3886_v45 = vpop.permute.xlu1 %3885 }
0x11c2   :  { %v3887_v48 = vsel %vm819_vm3, %v3886_v45, 0  ;;  %v5013_v45 = vand.u32 4294901760, %v5012_v36 }
0x11c3   :  { %v3958_v49 = vand.u32 4294901760, %v3887_v48 }
0x11c5   :  { %v3959_v10 = vsub.f32 %v3887_v48, %v3958_v49 }
0x11c7   :  { %v3960_v11 = vand.u32 4294901760, %v3959_v10 }
0x11c9   :  { %v3961_v15 = vsub.f32 %v3959_v10, %v3960_v11 }
0x11cb   :  { %v3962_v22 = vand.u32 4294901760, %v3961_v15 }
0x11cd   :  { %6227 = vmatmul.mubr.f32.vlgmr.msra.gmra.mrb[12].mxu0 %v3962_v22 }
0x11ce   :  { %6640 = vmatpush3.bf16.msra.mxu0 %v7137_v47  ;;  %6237 = vmatprep.mubr.msk.f32.mxu0 %vm6919_vm2, %v6920_v46 }
0x11cf   :  { %6641 = vmatprep.subr.bf16.mxu0 %v6918_v8 }
0x11d2   :  { %6643 = vmatpush3.bf16.msra.mxu0 %v7145_v51 }
0x11d3   :  { %6644 = vmatprep.subr.bf16.mxu0 %v6918_v8 }
0x11d5   :  { %6238 = vmatmul.mubr.f32.vlgmr.msra.gmra.mrb[12].mxu0 %v3958_v49 }
0x11d6   :  { %6646 = vmatpush3.bf16.msra.mxu0 %v7159_v19  ;;  %6248 = vmatprep.mubr.msk.f32.mxu0 %vm6919_vm2, %v6920_v46 }
0x11d7   :  { %6647 = vmatprep.subr.bf16.mxu0 %v6918_v8 }
0x11da   :  { %6649 = vmatpush3.bf16.msra.mxu0 %v7170_v21 }
0x11db   :  { %6650 = vmatprep.subr.bf16.mxu0 %v6918_v8 }
0x11dd   :  { %6249 = vmatmul.mubr.f32.vlgmr.msra.gmra.mrb[12].mxu0 %v3959_v10  ;;  %v5026_v10 = vsub.f32 %v5024_v26, %v5025_v44 }
0x11de   :  { %6652 = vmatpush3.bf16.msra.mxu0 %v7105_v18  ;;  %6259 = vmatprep.mubr.msk.f32.mxu0 %vm6919_vm2, %v6920_v46 }
0x11df   :  { %6653 = vmatprep.subr.bf16.mxu0 %v6918_v8  ;;  %v5027_v22 = vand.u32 4294901760, %v5026_v10 }
0x11e2   :  { %6655 = vmatpush3.bf16.msra.mxu0 %v7120_v37 }
0x11e3   :  { %6656 = vmatprep.subr.bf16.mxu0 %v6918_v8 }
0x11e5   :  { %6260 = vmatmul.mubr.f32.vlgmr.msra.gmra.mrb[12].mxu0 %v3960_v11 }
0x11e6   :  { %6658 = vmatpush3.bf16.msra.mxu0 %v7198_v23  ;;  %6270 = vmatprep.mubr.msk.f32.mxu0 %vm6919_vm2, %v6920_v46 }
0x11e7   :  { %6659 = vmatprep.subr.bf16.mxu0 %v6918_v8 }
0x11ea   :  { %6661 = vmatpush3.bf16.msra.mxu0 %v7209_v9 }
0x11eb   :  { %6662 = vmatprep.subr.bf16.mxu0 %v6918_v8 }
0x11ed   :  { %6271 = vmatmul.mubr.f32.vlgmr.msra.gmra.mrb[12].mxu0 %v3958_v49 }
0x11ee   :  { %6664 = vmatpush3.bf16.msra.mxu0 %v7105_v18  ;;  %6281 = vmatprep.mubr.msk.f32.mxu0 %vm6919_vm2, %v6920_v46 }
0x11ef   :  { %6665 = vmatprep.subr.bf16.mxu0 %v6918_v8 }
0x11f2   :  { %6667 = vmatpush3.bf16.msra.mxu0 %v7120_v37 }
0x11f3   :  { %6704 = vmatprep.subr.bf16.mxu0 %v6918_v8 }
0x11f5   :  { %6282 = vmatmul.mubr.f32.vlgmr.msra.gmra.mrb[12].mxu0 %v3958_v49  ;;  %v5019_v49 = vsub.f32 %v5017_v20, %v5018_v43 }
0x11f6   :  { %6358 = vmatprep.mubr.msk.f32.mxu0 %vm6919_vm2, %v6920_v46 }
0x11f7   :  { %v5020_v15 = vand.u32 4294901760, %v5019_v49 }
0x12c8   :  { %v4370_v24 = vpop.f32.mrb[12].mxu0 }
0x12c9   :  { %v4374_v25 = vadd.f32 %v7262_v4, %v4370_v24  ;;  %v6283_v55 = vpop.f32.mrb[13].mxu0  ;;  %v6714_v24 = vpack.c.bf16 %v5027_v22, %v5020_v15 }
0x12ca   :  { %v6720_v55 = vpack.c.bf16 %v5024_v26, %v5017_v20 }
0x12cb   :  { %6910 = vtanh.f32 %v4374_v25 }
0x12d5   :  { %v6911_v27 = vpop.eup %6910 }
0x12d6   :  { %4380 = vrot.lane.b32.xlu0 %v6911_v27, %s6921_s3  ;;  %v4376_v28 = vmul.f32 0.5, %v6911_v27 }
0x12d8   :  { %v4377_v29 = vadd.f32 0.5, %v4376_v28  ;;  %v6732_v28 = vpack.c.bf16 %v5025_v44, %v5018_v43 }
0x12da   :  { %v4378_v32 = vmul.f32 %v4377_v29, %v3877_v39 }
0x1348   :  { %v4381_v30 = vpop.permute.xlu0 %4380 }
0x1349   :  { %v4383_v31 = vmul.f32 %v4381_v30, %v4377_v29 }
0x134b   :  { %4385 = vrot.lane.b32.xlu1 %v4383_v31, %s6922_s22 }
0x13bd   :  { %v4386_v33 = vpop.permute.xlu1 %4385 }
0x13be   :  { %v4388_v34 = vadd.f32 %v4386_v33, %v4378_v32 }
0x13c0   :  { %6912 = vtanh.f32 %v4388_v34 }
0x13ca   :  { %v6913_v38 = vpop.eup %6912 }
0x13cb   :  { %4391 = vrot.lane.b32.xlu0 %v6913_v38, %s6921_s3 }
0x143d   :  { %v4392_v40 = vpop.permute.xlu0 %4391 }
0x143e   :  { %v4394_v4 = vmul.f32 %v4392_v40, %v4377_v29  ;;  %v5413_v40 = vld [vmem:[%s7601_s5] ss:$0 sm:$0xff] }
0x1440   :  { %4396 = vrot.lane.b32.xlu1 %v4394_v4, %s6922_s22 }
0x14b2   :  { %v4397_v41 = vpop.permute.xlu1 %4396 }
0x14b3   :  { %v4398_v42 = vsel %vm819_vm3, %v4397_v41, 0 }
0x14b4   :  { %v4469_v50 = vand.u32 4294901760, %v4398_v42 }
0x14b6   :  { %v4470_v52 = vsub.f32 %v4398_v42, %v4469_v50 }
0x14b8   :  { %v4471_v53 = vand.u32 4294901760, %v4470_v52 }
0x14ba   :  { %v4472_v54 = vsub.f32 %v4470_v52, %v4471_v53 }
0x14bc   :  { %v4473_v56 = vand.u32 4294901760, %v4472_v54 }
0x14be   :  { %6293 = vmatmul.mubr.f32.vlgmr.msra.gmra.mrb[16].mxu1 %v4473_v56 }
0x14bf   :  { %6676 = vmatpush3.bf16.msra.mxu1 %v7137_v47  ;;  %6303 = vmatprep.mubr.msk.f32.mxu1 %vm6919_vm2, %v6920_v46 }
0x14c0   :  { %6677 = vmatprep.subr.bf16.mxu1 %v6918_v8 }
0x14c3   :  { %6679 = vmatpush3.bf16.msra.mxu1 %v7145_v51 }
0x14c4   :  { %6680 = vmatprep.subr.bf16.mxu1 %v6918_v8 }
0x14c6   :  { %6304 = vmatmul.mubr.f32.vlgmr.msra.gmra.mrb[16].mxu1 %v4469_v50 }
0x14c7   :  { %6682 = vmatpush3.bf16.msra.mxu1 %v7159_v19  ;;  %6314 = vmatprep.mubr.msk.f32.mxu1 %vm6919_vm2, %v6920_v46 }
0x14c8   :  { %6683 = vmatprep.subr.bf16.mxu1 %v6918_v8 }
0x14cb   :  { %6685 = vmatpush3.bf16.msra.mxu1 %v7170_v21 }
0x14cc   :  { %6686 = vmatprep.subr.bf16.mxu1 %v6918_v8 }
0x14ce   :  { %6315 = vmatmul.mubr.f32.vlgmr.msra.gmra.mrb[16].mxu1 %v4470_v52 }
0x14cf   :  { %6688 = vmatpush3.bf16.msra.mxu1 %v7105_v18  ;;  %6325 = vmatprep.mubr.msk.f32.mxu1 %vm6919_vm2, %v6920_v46 }
0x14d0   :  { %6689 = vmatprep.subr.bf16.mxu1 %v6918_v8 }
0x14d3   :  { %6691 = vmatpush3.bf16.msra.mxu1 %v7120_v37 }
0x14d4   :  { %6692 = vmatprep.subr.bf16.mxu1 %v6918_v8 }
0x14d6   :  { %6326 = vmatmul.mubr.f32.vlgmr.msra.gmra.mrb[16].mxu1 %v4471_v53 }
0x14d7   :  { %6694 = vmatpush3.bf16.msra.mxu1 %v7198_v23  ;;  %6336 = vmatprep.mubr.msk.f32.mxu1 %vm6919_vm2, %v6920_v46 }
0x14d8   :  { %6695 = vmatprep.subr.bf16.mxu1 %v6918_v8 }
0x14db   :  { %6697 = vmatpush3.bf16.msra.mxu1 %v7209_v9 }
0x14dc   :  { %6698 = vmatprep.subr.bf16.mxu1 %v6918_v8 }
0x14de   :  { %6337 = vmatmul.mubr.f32.vlgmr.msra.gmra.mrb[16].mxu1 %v4469_v50 }
0x14df   :  { %6700 = vmatpush3.bf16.msra.mxu1 %v7105_v18  ;;  %6347 = vmatprep.mubr.msk.f32.mxu1 %vm6919_vm2, %v6920_v46 }
0x14e0   :  { %6701 = vmatprep.subr.bf16.mxu1 %v6918_v8 }
0x14e3   :  { %6703 = vmatpush3.bf16.msra.mxu1 %v7120_v37 }
0x14e6   :  { %6348 = vmatmul.mubr.f32.vlgmr.msra.gmra.mrb[16].mxu1 %v4469_v50 }
0x15b9   :  { %v4881_v47 = vpop.f32.mrb[16].mxu1 }
0x15ba   :  { %v4885_v51 = vadd.f32 %v7260_v2, %v4881_v47  ;;  %v6349_v19 = vpop.f32.mrb[17].mxu1  ;;  %v4906_v2 = vld [vmem:[%s7600_s4] sm:$0xff] }
0x15bb   :  { %v4923_v63 = vand.u32 4294901760, %v4906_v2 }
0x15bc   :  { %6914 = vtanh.f32 %v4885_v51 }
0x15bd   :  { %v7556_v3 = vpack.c.bf16 %v4926_v1, %v4923_v63  ;;  %v5003_v5 = vsub.f32 %v4906_v2, %v4923_v63 }
0x15bf   :  { %6706 = vmatpush3.bf16.msra.mxu0 %v7556_v3  ;;  %v5004_v14 = vand.u32 4294901760, %v5003_v5  ;;  %v6717_v25 = vpack.c.bf16 %v5010_v6, %v5003_v5 }
0x15c0   :  { %6707 = vmatprep.subr.bf16.mxu0 %v6918_v8 }
0x15c1   :  { %v5005_v35 = vsub.f32 %v5003_v5, %v5004_v14  ;;  %v6729_v27 = vpack.c.bf16 %v5011_v16, %v5004_v14 }
0x15c3   :  { %6709 = vmatpush3.bf16.msra.mxu0 %v6708_v17  ;;  %v5006_v39 = vand.u32 4294901760, %v5005_v35 }
0x15c4   :  { %6710 = vmatprep.subr.bf16.mxu0 %v6918_v8 }
0x15c5   :  { %v6711_v11 = vpack.c.bf16 %v5013_v45, %v5006_v39 }
0x15c6   :  { %v6915_v21 = vpop.eup %6914 }
0x15c7   :  { %4891 = vrot.lane.b32.xlu0 %v6915_v21, %s6921_s3  ;;  %v4887_v23 = vmul.f32 0.5, %v6915_v21 }
0x15c9   :  { %v4888_v9 = vadd.f32 0.5, %v4887_v23 }
0x15cb   :  { %v4889_v59 = vmul.f32 %v4888_v9, %v4388_v34 }
0x1639   :  { %v4892_v58 = vpop.permute.xlu0 %4891 }
0x163a   :  { %v4894_v18 = vmul.f32 %v4892_v58, %v4888_v9 }
0x163c   :  { %4896 = vrot.lane.b32.xlu1 %v4894_v18, %s6922_s22 }
0x16ae   :  { %v4897_v60 = vpop.permute.xlu1 %4896 }
0x16af   :  { %v4899_v0 = vadd.f32 %v4897_v60, %v4889_v59 }
0x16b1   :  { %6916 = vtanh.f32 %v4899_v0 }
0x16bb   :  { %v6917_v37 = vpop.eup %6916 }
0x16bc   :  { %4902 = vrot.lane.b32.xlu0 %v6917_v37, %s6921_s3 }
0x172e   :  { %v4903_v62 = vpop.permute.xlu0 %4902 }
0x172f   :  { %v4905_v48 = vmul.f32 %v4903_v62, %v4888_v9 }
0x1731   :  { %4918 = vrot.lane.b32.xlu1 %v4905_v48, %s6922_s22 }
0x17a3   :  { %v4919_v29 = vpop.permute.xlu1 %4918 }
0x17a4   :  { %v4920_v30 = vsel %vm819_vm3, %v4919_v29, 0 }
0x17a5   :  { %v4991_v31 = vand.u32 4294901760, %v4920_v30 }
0x17a7   :  { %v4992_v32 = vsub.f32 %v4920_v30, %v4991_v31 }
0x17a9   :  { %v4993_v33 = vand.u32 4294901760, %v4992_v32 }
0x17ab   :  { %v4994_v34 = vsub.f32 %v4992_v32, %v4993_v33 }
0x17ad   :  { %v4995_v38 = vand.u32 4294901760, %v4994_v34 }
0x17af   :  { %6359 = vmatmul.mubr.f32.vlgmr.msra.gmra.mrb[14].mxu0 %v4995_v38 }
0x17b0   :  { %6712 = vmatpush3.bf16.msra.mxu0 %v6711_v11  ;;  %6369 = vmatprep.mubr.msk.f32.mxu0 %vm6919_vm2, %v6920_v46 }
0x17b1   :  { %6713 = vmatprep.subr.bf16.mxu0 %v6918_v8 }
0x17b4   :  { %6715 = vmatpush3.bf16.msra.mxu0 %v6714_v24 }
0x17b5   :  { %6716 = vmatprep.subr.bf16.mxu0 %v6918_v8 }
0x17b7   :  { %6370 = vmatmul.mubr.f32.vlgmr.msra.gmra.mrb[14].mxu0 %v4991_v31 }
0x17b8   :  { %6718 = vmatpush3.bf16.msra.mxu0 %v6717_v25  ;;  %6380 = vmatprep.mubr.msk.f32.mxu0 %vm6919_vm2, %v6920_v46 }
0x17b9   :  { %6719 = vmatprep.subr.bf16.mxu0 %v6918_v8 }
0x17bc   :  { %6721 = vmatpush3.bf16.msra.mxu0 %v6720_v55 }
0x17bd   :  { %6722 = vmatprep.subr.bf16.mxu0 %v6918_v8 }
0x17bf   :  { %6381 = vmatmul.mubr.f32.vlgmr.msra.gmra.mrb[14].mxu0 %v4992_v32 }
0x17c0   :  { %6724 = vmatpush3.bf16.msra.mxu0 %v7556_v3  ;;  %6391 = vmatprep.mubr.msk.f32.mxu0 %vm6919_vm2, %v6920_v46 }
0x17c1   :  { %6725 = vmatprep.subr.bf16.mxu0 %v6918_v8 }
0x17c4   :  { %6727 = vmatpush3.bf16.msra.mxu0 %v6708_v17 }
0x17c5   :  { %6728 = vmatprep.subr.bf16.mxu0 %v6918_v8 }
0x17c7   :  { %6392 = vmatmul.mubr.f32.vlgmr.msra.gmra.mrb[14].mxu0 %v4993_v33 }
0x17c8   :  { %6730 = vmatpush3.bf16.msra.mxu0 %v6729_v27  ;;  %6402 = vmatprep.mubr.msk.f32.mxu0 %vm6919_vm2, %v6920_v46 }
0x17c9   :  { %6731 = vmatprep.subr.bf16.mxu0 %v6918_v8 }
0x17cc   :  { %6733 = vmatpush3.bf16.msra.mxu0 %v6732_v28 }
0x17cd   :  { %6734 = vmatprep.subr.bf16.mxu0 %v6918_v8 }
0x17cf   :  { %6403 = vmatmul.mubr.f32.vlgmr.msra.gmra.mrb[14].mxu0 %v4991_v31 }
0x17d0   :  { %6736 = vmatpush3.bf16.msra.mxu0 %v7556_v3  ;;  %6413 = vmatprep.mubr.msk.f32.mxu0 %vm6919_vm2, %v6920_v46 }
0x17d1   :  { %6737 = vmatprep.subr.bf16.mxu0 %v6918_v8 }
0x17d4   :  { %6739 = vmatpush3.bf16.msra.mxu0 %v6708_v17 }
0x17d7   :  { %6414 = vmatmul.mubr.f32.vlgmr.msra.gmra.mrb[14].mxu0 %v4991_v31 }
0x18aa   :  { %v5403_v4 = vpop.f32.mrb[14].mxu0 }
0x18ab   :  { %v6758_v41 = vadd.f32 %v5413_v40, %v5403_v4  ;;  %v6415_v42 = vpop.f32.mrb[15].mxu0 }
0x18ad   :  { %5407 = vst [vmem:[%s7602_s6] sm:$0xff] %v6758_v41 }

</bundles_post_ra>
